<compile_context>
chip_gen: v7x
topology: tpu7x:2x2x1
jax: 0.10.0
libtpu: 0.0.40
codegen_flags: <defaults>
</compile_context>

<pallas_src>
import functools

import jax
import jax.numpy as jnp
from jax.experimental import pallas as pl
from jax.experimental.pallas import tpu as pltpu


def _prompt_encoder_kernel(ids_ref,      # VMEM (BN, 1)    int32
                           table_ref,    # VMEM (ncand, E) w-dtype (single-buffered)
                           w1_ref,       # VMEM (E, Th)    w-dtype (hidden tile)
                           b1_ref,       # VMEM (1, Th)    f32
                           w2_ref,       # VMEM (Th, E)    w-dtype
                           b2_ref,       # VMEM (1, E)     f32     (single-buffered)
                           o_ref,        # VMEM (BN, E)    f32     (resident accumulator)
                           x_ref,        # VMEM scratch (BN, E)  table dtype
                           *, block_n, ncand):
    j = pl.program_id(1)

    # ---- j == 0: embedding gather (one-hot MXU matmul) + accumulator init ---
    # One-hot weights are exactly representable in bf16/f32, so the gather is
    # exact; an out-of-range index yields an all-zero row (OOB-safe).
    @pl.when(j == 0)
    def _gather_and_init():
        idx = ids_ref[...]                                              # (BN, 1) i32
        cols = jax.lax.broadcasted_iota(jnp.int32, (block_n, ncand), 1)
        one_hot = (cols == idx).astype(table_ref.dtype)                 # (BN, NC)
        x = jnp.dot(one_hot, table_ref[...],
                    preferred_element_type=jnp.float32)                 # (BN, E) f32
        x_ref[...] = x.astype(x_ref.dtype)
        o_ref[...] = jnp.broadcast_to(b2_ref[...], o_ref.shape)         # b2 init

    # ---- Layer 1 (one hidden tile) + bias + ReLU ----------------------------
    x = x_ref[...]                                                       # (BN, E)
    h = jnp.dot(x, w1_ref[...], preferred_element_type=jnp.float32)      # (BN, Th)
    h = jnp.maximum(h + b1_ref[...], 0.0)

    # ---- Layer 2: accumulate hidden tiles into the resident f32 output ------
    o_ref[...] += jnp.dot(h.astype(w2_ref.dtype), w2_ref[...],
                          preferred_element_type=jnp.float32)


def _vmem_capacity_bytes():
    """Physical VMEM per TensorCore; conservative fallback if undetectable."""
    try:
        info = pltpu.get_tpu_info()
        cap = getattr(info, "vmem_capacity_bytes", None)
        if cap:
            return int(cap)
    except Exception:
        pass
    return 64 << 20  # v7x-sized (smallest current generation); safe everywhere


def _vmem_footprint_bytes(*, emsize, ncand, block_n, block_h, wbytes, tbytes):
    """Approximate VMEM use of one pipeline configuration."""
    streamed = 2 * (emsize * block_h * wbytes        # W1 tile (double-buffered)
                    + block_h * emsize * wbytes      # W2 tile (double-buffered)
                    + 8 * block_h * 4                # b1 tile (sublane-padded)
                    + block_n * 128 * 4)             # ids (lane-padded)
    resident = (max(ncand, 8) * emsize * tbytes      # table (Buffered(1))
                + 8 * emsize * 4                     # b2    (Buffered(1))
                + 2 * block_n * emsize * 4           # output block
                + block_n * emsize * tbytes)         # x scratch
    return streamed + resident


def prompt_encoder_forward(indices, table, w1, b1, w2, b2, *,
                           block_n=None, block_h=None, vmem_limit_bytes=None):
    """indices: (N,) integer.  table/w1/w2 may be f32 or bf16 (bf16 recommended
    at the real emsize=5120); biases f32.  Returns (N, E) float32."""
    n = int(indices.shape[0])
    ncand, emsize = table.shape
    assert emsize % 128 == 0, "emsize must be a multiple of 128"

    wbytes = jnp.dtype(w1.dtype).itemsize
    tbytes = jnp.dtype(table.dtype).itemsize

    # ---- Row blocking --------------------------------------------------------
    # One fat block for small N (per-grid-step overhead dominates); 128-row
    # blocks for 128 < N <= 512 so the "parallel" row axis has >= 2 blocks
    # (feeds both v7x TensorCores / maps onto v5e's 128x128 MXU tiles); 256 above.
    if block_n is None:
        if n <= 128:
            block_n = n
        elif n <= 512:
            block_n = 128
        else:
            block_n = 256
    block_n = max(16, -(-block_n // 16) * 16)        # multiple of 16 (bf16 sublanes)
    n_pad = -(-n // block_n) * block_n

    # ---- Hidden-dim tiling ---------------------------------------------------
    # Pick the largest block_h (multiple of 128, divides emsize) whose pipeline
    # footprint fits ~75% of this chip's VMEM (64 MiB/TC v7x, 128 MiB v5e/v6e).
    vmem_cap = _vmem_capacity_bytes()
    if block_h is None:
        budget = int(0.75 * vmem_cap)
        block_h = 128
        for cand in range(emsize, 0, -128):
            if emsize % cand == 0 and _vmem_footprint_bytes(
                    emsize=emsize, ncand=ncand, block_n=block_n, block_h=cand,
                    wbytes=wbytes, tbytes=tbytes) <= budget:
                block_h = cand
                break
    assert emsize % block_h == 0, "emsize must be a multiple of block_h"
    assert block_h % 128 == 0, "block_h must be a multiple of 128"

    # Always pass an explicit scoped-VMEM limit (defaults are only 16/32 MiB).
    if vmem_limit_bytes is None:
        footprint = _vmem_footprint_bytes(
            emsize=emsize, ncand=ncand, block_n=block_n, block_h=block_h,
            wbytes=wbytes, tbytes=tbytes)
        vmem_limit_bytes = int(min(vmem_cap, max(32 << 20, footprint + (8 << 20))))

    ids = indices.astype(jnp.int32)
    if n_pad != n:
        ids = jnp.pad(ids, (0, n_pad - n))            # pad rows use index 0
    ids_col = ids.reshape(n_pad, 1)

    num_row_blocks = n_pad // block_n
    grid = (num_row_blocks, emsize // block_h)

    kernel = functools.partial(_prompt_encoder_kernel,
                               block_n=block_n, ncand=ncand)

    # Cost estimate: gather matmul happens once per row block; W1/W2/b1 are
    # re-streamed once per row block; table/b2 are resident.
    flops = (2 * n_pad * ncand * emsize               # one-hot gather matmul
             + 2 * 2 * n_pad * emsize * emsize)       # the two Linear layers
    bytes_accessed = (4 * n_pad                                        # indices
                      + ncand * emsize * tbytes                        # table
                      + num_row_blocks * 2 * emsize * emsize * wbytes  # W1, W2
                      + num_row_blocks * emsize * 4                    # b1
                      + emsize * 4                                     # b2
                      + 4 * n_pad * emsize)                            # output

    out = pl.pallas_call(
        kernel,
        out_shape=jax.ShapeDtypeStruct((n_pad, emsize), jnp.float32),
        grid_spec=pltpu.PrefetchScalarGridSpec(
            num_scalar_prefetch=0,
            grid=grid,
            in_specs=[
                pl.BlockSpec((block_n, 1), lambda i, j: (i, 0)),        # ids
                pl.BlockSpec((ncand, emsize), lambda i, j: (0, 0),
                             pipeline_mode=pl.Buffered(1)),             # table (invariant)
                pl.BlockSpec((emsize, block_h), lambda i, j: (0, j)),   # W1 tile
                pl.BlockSpec((1, block_h), lambda i, j: (0, j)),        # b1 tile
                pl.BlockSpec((block_h, emsize), lambda i, j: (j, 0)),   # W2 tile
                pl.BlockSpec((1, emsize), lambda i, j: (0, 0),
                             pipeline_mode=pl.Buffered(1)),             # b2 (invariant)
            ],
            out_specs=pl.BlockSpec((block_n, emsize), lambda i, j: (i, 0)),
            scratch_shapes=[pltpu.VMEM((block_n, emsize), table.dtype)],  # gathered x
        ),
        compiler_params=pltpu.CompilerParams(
            dimension_semantics=("parallel", "arbitrary"),
            vmem_limit_bytes=vmem_limit_bytes),
        cost_estimate=pl.CostEstimate(flops=flops, transcendentals=0,
                                      bytes_accessed=bytes_accessed),
    )(ids_col, table, w1, b1, w2, b2)

    return out[:n] if n_pad != n else out


def _reference(indices, table, w1, b1, w2, b2):
    x = jnp.take(table, indices, axis=0)
    h = jnp.maximum(x @ w1 + b1, 0.0)
    return h @ w2 + b2


if __name__ == "__main__":
    # Small, module-consistent shapes (emsize scaled down from 5120 -> 512).
    NCAND = 16      # ncandidate
    EMSIZE = 512    # self.emsize (scaled down, multiple of 128)
    N = 32          # batch of candidate indices

    key = jax.random.PRNGKey(0)
    k_tab, k_w1, k_b1, k_w2, k_b2, k_idx = jax.random.split(key, 6)

    # Deterministic parameter init (mimics nn.Embedding ~N(0,1) and
    # nn.Linear uniform(-1/sqrt(fan_in), 1/sqrt(fan_in))).
    table_f32 = jax.random.normal(k_tab, (NCAND, EMSIZE), dtype=jnp.float32)
    bound = 1.0 / (EMSIZE ** 0.5)
    # Linear weights stored as (in, out) == PyTorch weight.T so kernel does x @ W.
    w1_f32 = jax.random.uniform(k_w1, (EMSIZE, EMSIZE), jnp.float32, -bound, bound)
    b1 = jax.random.uniform(k_b1, (1, EMSIZE), jnp.float32, -bound, bound)
    w2_f32 = jax.random.uniform(k_w2, (EMSIZE, EMSIZE), jnp.float32, -bound, bound)
    b2 = jax.random.uniform(k_b2, (1, EMSIZE), jnp.float32, -bound, bound)

    indices = jax.random.randint(k_idx, (N,), 0, NCAND, dtype=jnp.int32)

    # bf16 weight / table storage (halves the HBM weight stream at the real
    # emsize=5120); the kernel accumulates in f32 on the MXU.
    table_bf16 = table_f32.astype(jnp.bfloat16)
    w1_bf16 = w1_f32.astype(jnp.bfloat16)
    w2_bf16 = w2_f32.astype(jnp.bfloat16)

    # Reference in f32 math on the same (bf16-quantized) parameters.
    ref_bf16 = _reference(indices, table_bf16.astype(jnp.float32),
                          w1_bf16.astype(jnp.float32), b1,
                          w2_bf16.astype(jnp.float32), b2)
    ref_f32 = _reference(indices, table_f32, w1_f32, b1, w2_f32, b2)

    # 1) Default bf16 config: one fat row block, auto block_h (grid = (1, 1)).
    out = prompt_encoder_forward(indices, table_bf16, w1_bf16, b1, w2_bf16, b2)
    out = jax.block_until_ready(out)
    assert out.shape == (N, EMSIZE)
    assert jnp.allclose(out, ref_bf16, atol=2e-2, rtol=2e-2), \
        "mismatch (fused bf16 config)"

    # 2) Tiled bf16 config: exercises the row-tiled path (gather cached in VMEM
    #    scratch per row block) + hidden-dim accumulator, grid = (2, 4) — the
    #    structure used at the real emsize=5120 / large N.
    out_t = prompt_encoder_forward(indices, table_bf16, w1_bf16, b1, w2_bf16, b2,
                                   block_n=16, block_h=128)
    out_t = jax.block_until_ready(out_t)
    assert out_t.shape == (N, EMSIZE)
    assert jnp.allclose(out_t, ref_bf16, atol=2e-2, rtol=2e-2), \
        "mismatch (tiled bf16 config)"

    # 3) Pure-f32 config: exact match against the f32 reference (dtype-generic path).
    out_f = prompt_encoder_forward(indices, table_f32, w1_f32, b1, w2_f32, b2,
                                   block_n=16, block_h=256)
    out_f = jax.block_until_ready(out_f)
    assert out_f.shape == (N, EMSIZE)
    assert jnp.allclose(out_f, ref_f32, atol=1e-4, rtol=1e-4), \
        "mismatch (tiled f32 config)"

    print("KERNEL_OK")
</pallas_src>

<mosaic_0001>
module attributes {stable_mosaic.version = 11 : i64} {
  func.func @_prompt_encoder_kernel(%arg0: i32, %arg1: i32, %arg2: memref<32x1xi32, #tpu.memory_space<vmem>>, %arg3: memref<16x512xbf16, #tpu.memory_space<vmem>>, %arg4: memref<512x512xbf16, #tpu.memory_space<vmem>>, %arg5: memref<1x512xf32, #tpu.memory_space<vmem>>, %arg6: memref<512x512xbf16, #tpu.memory_space<vmem>>, %arg7: memref<1x512xf32, #tpu.memory_space<vmem>>, %arg8: memref<32x512xf32, #tpu.memory_space<vmem>>, %arg9: memref<32x512xbf16, #tpu.memory_space<vmem>>) attributes {dimension_semantics = [#tpu.dimension_semantics<parallel>, #tpu.dimension_semantics<arbitrary>], iteration_bounds = array<i64: 1, 1>, scalar_prefetch = 0 : i64, scratch_operands = 1 : i64, tpu.core_type = #tpu.core_type<tc>, window_params = [{transform_indices = @transform_0, window_bounds = array<i64: 32, 1>}, {pipeline_mode = #tpu.pipeline_mode<synchronous>, transform_indices = @transform_1, window_bounds = array<i64: 16, 512>}, {transform_indices = @transform_2, window_bounds = array<i64: 512, 512>}, {transform_indices = @transform_3, window_bounds = array<i64: 1, 512>}, {transform_indices = @transform_4, window_bounds = array<i64: 512, 512>}, {pipeline_mode = #tpu.pipeline_mode<synchronous>, transform_indices = @transform_5, window_bounds = array<i64: 1, 512>}, {transform_indices = @transform_6, window_bounds = array<i64: 32, 512>}]} {
    %c0_i32 = arith.constant 0 : i32
    %0 = arith.cmpi eq, %arg1, %c0_i32 : i32
    %1 = arith.extui %0 : i1 to i32
    %c0_i32_0 = arith.constant 0 : i32
    %2 = arith.cmpi ne, %1, %c0_i32_0 : i32
    scf.if %2 {
      %c0_14 = arith.constant 0 : index
      %c0_15 = arith.constant 0 : index
      %17 = vector.load %arg2[%c0_14, %c0_15] : memref<32x1xi32, #tpu.memory_space<vmem>>, vector<32x1xi32>
      %18 = tpu.iota {dimensions = array<i32: 1>} : vector<32x16xi32>
      %19 = vector.broadcast %17 : vector<32x1xi32> to vector<32x16xi32>
      %20 = arith.cmpi eq, %18, %19 : vector<32x16xi32>
      %21 = arith.extui %20 : vector<32x16xi1> to vector<32x16xi32>
      %22 = arith.sitofp %21 : vector<32x16xi32> to vector<32x16xf32>
      %23 = arith.truncf %22 : vector<32x16xf32> to vector<32x16xbf16>
      %c0_16 = arith.constant 0 : index
      %c0_17 = arith.constant 0 : index
      %24 = vector.load %arg3[%c0_16, %c0_17] : memref<16x512xbf16, #tpu.memory_space<vmem>>, vector<16x512xbf16>
      %cst_18 = arith.constant dense<0.000000e+00> : vector<32x512xf32>
      %25 = tpu.matmul %23, %24, %cst_18 {dimension_numbers = #tpu.dot_dimension_numbers<[1], [0], [0], [1], [0, 0, 1, 1], [], []>} : vector<32x16xbf16>, vector<16x512xbf16>, vector<32x512xf32> -> vector<32x512xf32>
      %26 = arith.truncf %25 : vector<32x512xf32> to vector<32x512xbf16>
      %c0_19 = arith.constant 0 : index
      %c0_20 = arith.constant 0 : index
      %27 = vector.load %arg9[%c0_19, %c0_20] : memref<32x512xbf16, #tpu.memory_space<vmem>>, vector<32x512xbf16>
      tpu.vector_store %arg9[%c0_19, %c0_20], %26 {strides = array<i32>} : memref<32x512xbf16, #tpu.memory_space<vmem>>, vector<32x512xbf16>,
      %c0_21 = arith.constant 0 : index
      %c0_22 = arith.constant 0 : index
      %28 = vector.load %arg7[%c0_21, %c0_22] : memref<1x512xf32, #tpu.memory_space<vmem>>, vector<1x512xf32>
      %29 = vector.shape_cast %28 : vector<1x512xf32> to vector<1x512xf32>
      %30 = vector.broadcast %29 : vector<1x512xf32> to vector<32x512xf32>
      %c0_23 = arith.constant 0 : index
      %c0_24 = arith.constant 0 : index
      %31 = vector.load %arg8[%c0_23, %c0_24] : memref<32x512xf32, #tpu.memory_space<vmem>>, vector<32x512xf32>
      tpu.vector_store %arg8[%c0_23, %c0_24], %30 {strides = array<i32>} : memref<32x512xf32, #tpu.memory_space<vmem>>, vector<32x512xf32>,
    } else {
    }
    %c0 = arith.constant 0 : index
    %c0_1 = arith.constant 0 : index
    %3 = vector.load %arg9[%c0, %c0_1] : memref<32x512xbf16, #tpu.memory_space<vmem>>, vector<32x512xbf16>
    %c0_2 = arith.constant 0 : index
    %c0_3 = arith.constant 0 : index
    %4 = vector.load %arg4[%c0_2, %c0_3] : memref<512x512xbf16, #tpu.memory_space<vmem>>, vector<512x512xbf16>
    %cst = arith.constant dense<0.000000e+00> : vector<32x512xf32>
    %5 = tpu.matmul %3, %4, %cst {dimension_numbers = #tpu.dot_dimension_numbers<[1], [0], [0], [1], [0, 0, 1, 1], [], []>} : vector<32x512xbf16>, vector<512x512xbf16>, vector<32x512xf32> -> vector<32x512xf32>
    %c0_4 = arith.constant 0 : index
    %c0_5 = arith.constant 0 : index
    %6 = vector.load %arg5[%c0_4, %c0_5] : memref<1x512xf32, #tpu.memory_space<vmem>>, vector<1x512xf32>
    %7 = vector.broadcast %6 : vector<1x512xf32> to vector<32x512xf32>
    %8 = arith.addf %5, %7 : vector<32x512xf32>
    %cst_6 = arith.constant 0.000000e+00 : f32
    %9 = vector.broadcast %cst_6 : f32 to vector<32x512xf32>
    %10 = arith.maximumf %8, %9 : vector<32x512xf32>
    %c0_7 = arith.constant 0 : index
    %c0_8 = arith.constant 0 : index
    %11 = vector.load %arg8[%c0_7, %c0_8] : memref<32x512xf32, #tpu.memory_space<vmem>>, vector<32x512xf32>
    %12 = arith.truncf %10 : vector<32x512xf32> to vector<32x512xbf16>
    %c0_9 = arith.constant 0 : index
    %c0_10 = arith.constant 0 : index
    %13 = vector.load %arg6[%c0_9, %c0_10] : memref<512x512xbf16, #tpu.memory_space<vmem>>, vector<512x512xbf16>
    %cst_11 = arith.constant dense<0.000000e+00> : vector<32x512xf32>
    %14 = tpu.matmul %12, %13, %cst_11 {dimension_numbers = #tpu.dot_dimension_numbers<[1], [0], [0], [1], [0, 0, 1, 1], [], []>} : vector<32x512xbf16>, vector<512x512xbf16>, vector<32x512xf32> -> vector<32x512xf32>
    %15 = arith.addf %11, %14 : vector<32x512xf32>
    %c0_12 = arith.constant 0 : index
    %c0_13 = arith.constant 0 : index
    %16 = vector.load %arg8[%c0_12, %c0_13] : memref<32x512xf32, #tpu.memory_space<vmem>>, vector<32x512xf32>
    tpu.vector_store %arg8[%c0_12, %c0_13], %15 {strides = array<i32>} : memref<32x512xf32, #tpu.memory_space<vmem>>, vector<32x512xf32>,
    return
  }
  func.func @transform_0(%arg0: i32, %arg1: i32) -> (i32, i32) {
    %c0_i32 = arith.constant 0 : i32
    %c0_i32_0 = arith.constant 0 : i32
    return %arg0, %c0_i32 : i32, i32
  }
  func.func @transform_1(%arg0: i32, %arg1: i32) -> (i32, i32) {
    %c0_i32 = arith.constant 0 : i32
    %c0_i32_0 = arith.constant 0 : i32
    %c0_i32_1 = arith.constant 0 : i32
    return %c0_i32, %c0_i32_0 : i32, i32
  }
  func.func @transform_2(%arg0: i32, %arg1: i32) -> (i32, i32) {
    %c0_i32 = arith.constant 0 : i32
    %c0_i32_0 = arith.constant 0 : i32
    return %c0_i32, %arg1 : i32, i32
  }
  func.func @transform_3(%arg0: i32, %arg1: i32) -> (i32, i32) {
    %c0_i32 = arith.constant 0 : i32
    %c0_i32_0 = arith.constant 0 : i32
    return %c0_i32, %arg1 : i32, i32
  }
  func.func @transform_4(%arg0: i32, %arg1: i32) -> (i32, i32) {
    %c0_i32 = arith.constant 0 : i32
    %c0_i32_0 = arith.constant 0 : i32
    return %arg1, %c0_i32 : i32, i32
  }
  func.func @transform_5(%arg0: i32, %arg1: i32) -> (i32, i32) {
    %c0_i32 = arith.constant 0 : i32
    %c0_i32_0 = arith.constant 0 : i32
    %c0_i32_1 = arith.constant 0 : i32
    return %c0_i32, %c0_i32_0 : i32, i32
  }
  func.func @transform_6(%arg0: i32, %arg1: i32) -> (i32, i32) {
    %c0_i32 = arith.constant 0 : i32
    %c0_i32_0 = arith.constant 0 : i32
    return %arg0, %c0_i32 : i32, i32
  }
}

</mosaic_0001>

<bundles_post_ra>
// kernel: tpu_custom_call.1
= control target key start
LH: loop header
LB: loop body
LE: loop exit
PB: predicated region body
PF: predicated region fallthrough
CT: control target
= control target key end

     0   :  { %11 = vsyncpa [#allocation4], 0  ;;  %s3311_s0 = inlined_call_operand.vmem [shape: s32[32,1], index: 0, kind: input, shape index: {}]   ;;  %s3312_s1 = inlined_call_operand.vmem [shape: bf16[16,512], index: 1, kind: input, shape index: {}]   ;;  %s3313_s2 = inlined_call_operand.hbm [shape: bf16[512,512], index: 2, kind: input, shape index: {}]   ;;  %s3314_s3 = inlined_call_operand.vmem [shape: f32[1,512], index: 3, kind: input, shape index: {}]   ;;  %s3315_s4 = inlined_call_operand.hbm [shape: bf16[512,512], index: 4, kind: input, shape index: {}]   ;;  %s3316_s5 = inlined_call_operand.vmem [shape: f32[1,512], index: 5, kind: input, shape index: {}]   ;;  %s3317_s6 = inlined_call_operand.hbm [shape: f32[32,512], index: 6, kind: output, shape index: {}]  }
   0x1   :  { %12 = vsyncpa [#allocation7], 0 }
   0x2   :  { %13 = vsyncpa [#allocation5], 0  ;;  %s3149_s21 = smov [#allocation3]   ;;  %s3077_s25 = scalar_lea.hbm %s3313_s2, 16384 }
   0x3   :  { %s23_s22 = sshll.u32 %s3149_s21, 4  ;;  %p3078_p0 = scmp.ne.s32.totalorder %s3313_s2, %s3077_s25  ;;  %s24_s22 = int_to_ptr.vmem [resolvable:$true] %s23_s22 }
   0x4   :  { %p3081_p1 = scmp.lt.u32.totalorder %s3077_s25, %s3313_s2 }
   0x6   :  { %p3083_p2 = pnand %p3081_p1, %p3078_p0 }
   0x8   :  { %3086 = shalt.err (!%p3083_p2)
}
   0x9   :  { %s3087_s30 = scalar_lea.vmem %s24_s22, 16384  ;;  %p3092_p4 = scmp.lt.s32.totalorder %s24_s22, %s24_s22 }
   0xa   :  { %p3088_p3 = scmp.ne.s32.totalorder %s24_s22, %s3087_s30  ;;  %p3093_p5 = scmp.lt.s32.totalorder %s3087_s30, %s3087_s30 }
   0xc   :  { %p3094_p6 = por %p3093_p5, %p3092_p4 }
   0xe   :  { %p3095_p7 = pnand %p3094_p6, %p3088_p3 }
  0x10   :  { %3098 = shalt.err (!%p3095_p7)
}
  0x11   :  { %s3150_s7 = smov 256   ;;  %s3151_s8 = smov 16  }
  0x12   :  { %29 = dma.hbm_to_vmem [thread:$0]  %s3313_s2, 16384, %s24_s22, [#allocation4], %s3150_s7, %s3150_s7, %s3151_s8  }
  0x13   :  { %s3152_s11 = smov [#allocation6]   ;;  %s3099_s15 = scalar_lea.hbm %s3315_s4, 16384 }
  0x14   :  { %s37_s12 = sshll.u32 %s3152_s11, 4  ;;  %p3100_p8 = scmp.ne.s32.totalorder %s3315_s4, %s3099_s15  ;;  %s38_s12 = int_to_ptr.vmem [resolvable:$true] %s37_s12 }
  0x15   :  { %p3103_p9 = scmp.lt.u32.totalorder %s3099_s15, %s3315_s4 }
  0x17   :  { %p3105_p10 = pnand %p3103_p9, %p3100_p8 }
  0x19   :  { %3108 = shalt.err (!%p3105_p10)
}
  0x1a   :  { %s3109_s20 = scalar_lea.vmem %s38_s12, 16384  ;;  %p3114_p12 = scmp.lt.s32.totalorder %s38_s12, %s38_s12 }
  0x1b   :  { %p3110_p11 = scmp.ne.s32.totalorder %s38_s12, %s3109_s20  ;;  %p3115_p13 = scmp.lt.s32.totalorder %s3109_s20, %s3109_s20 }
  0x1d   :  { %p3116_p0 = por %p3115_p13, %p3114_p12 }
  0x1f   :  { %p3117_p1 = pnand %p3116_p0, %p3110_p11 }
  0x21   :  { %3120 = shalt.err (!%p3117_p1)
}
  0x22   :  { %43 = dma.hbm_to_vmem [thread:$0]  %s3315_s4, 16384, %s38_s12, [#allocation7], %s3150_s7, %s3150_s7, %s3151_s8  }
  0x23   :  { %3143 = dma.done.wait [#allocation4], 16384  }
  0x24   :  { %3144 = vsyncadd [#allocation4], 4294950912 }
  0x25   :  { %3145 = dma.done.wait [#allocation7], 16384  }
  0x26   :  { %3146 = vsyncadd [#allocation7], 4294950912  ;;  %v3153_v0 = vmov 0   ;;  %v57_v1 = vld [vmem:[%s3311_s0] sm:$0xff]  ;;  %v58_v2 = vld [vmem:[%s3311_s0 + $0x8] sm:$0xff]  ;;  %v61_v11 = vlaneseq  ;;  %v3154_v17 = vmov 0.0  }
  0x27   :  { %2685 = vset.pattern.permute.xlu0 %v3153_v0  ;;  %2686 = vset.pattern.permute.xlu1 %v3153_v0  ;;  %v59_v3 = vld [vmem:[%s3311_s0 + $0x10] sm:$0xff]  ;;  %v60_v4 = vld [vmem:[%s3311_s0 + $0x18] sm:$0xff]  ;;  %vm113_vm2 = vcmask 130048  }
  0x28   :  { %152 = vmatprep.mubr.bf16.mxu0 %v3153_v0  ;;  %205 = vmatprep.mubr.bf16.mxu1 %v3153_v0  ;;  %v2687_v5 = vld [vmem:[%s3312_s1 + $0x4] ss:$16 sps:$4 sm:$0xff]   ;;  %v2689_v6 = vld [vmem:[%s3312_s1 + $0xc] ss:$16 sps:$4 sm:$0xff]   ;;  %v2691_v7 = vld [vmem:[%s3312_s1] ss:$16 sps:$4 sm:$0xff]  }
  0x29   :  { %64 = vperm.xlu0 %2685, %v57_v1   ;;  %70 = vperm.xlu1 %2686, %v59_v3   ;;  %v2692_v8 = vld [vmem:[%s3312_s1 + $0x8] ss:$16 sps:$4 sm:$0xff]   ;;  %v2695_v9 = vld [vmem:[#allocation3 + $0x4] ss:$16 sps:$4 sm:$0xff]   ;;  %v2698_v10 = vld [vmem:[#allocation3 + $0xc] ss:$16 sps:$4 sm:$0xff]  }
  0x2a   :  { %120 = vmatprep.subr.bf16.mxu0 %v2687_v5  ;;  %173 = vmatprep.subr.bf16.mxu1 %v2689_v6  ;;  %v62_v12 = vand.u32 127, %v61_v11  ;;  %v2693_v21 = vld [vmem:[#allocation3] ss:$16 sps:$4 sm:$0xff]   ;;  %v2696_v22 = vld [vmem:[#allocation3 + $0x8] ss:$16 sps:$4 sm:$0xff]  }
  0x2b   :  { %121 = vmatpush1.bf16.msra.mxu0 %v2691_v7  ;;  %174 = vmatpush1.bf16.msra.mxu1 %v2692_v8  ;;  %v2701_v23 = vld [vmem:[#allocation3 + $0x24] ss:$16 sps:$4 sm:$0xff]   ;;  %v2704_v24 = vld [vmem:[#allocation3 + $0x2c] ss:$16 sps:$4 sm:$0xff]   ;;  %v2699_v27 = vld [vmem:[#allocation3 + $0x20] ss:$16 sps:$4 sm:$0xff]  }
  0x2c   :  { %1078 = vmatprep.subr.bf16.mxu0 %v2695_v9  ;;  %1184 = vmatprep.subr.bf16.mxu1 %v2698_v10  ;;  %v2702_v28 = vld [vmem:[#allocation3 + $0x28] ss:$16 sps:$4 sm:$0xff]   ;;  %v2707_v29 = vld [vmem:[#allocation3 + $0x44] ss:$16 sps:$4 sm:$0xff]   ;;  %v2710_v30 = vld [vmem:[#allocation3 + $0x4c] ss:$16 sps:$4 sm:$0xff]  }
  0x2d   :  { %67 = vperm.xlu0 %2685, %v58_v2   ;;  %73 = vperm.xlu1 %2686, %v60_v4   ;;  %v2705_v32 = vld [vmem:[#allocation3 + $0x40] ss:$16 sps:$4 sm:$0xff]   ;;  %v2708_v33 = vld [vmem:[#allocation3 + $0x48] ss:$16 sps:$4 sm:$0xff]   ;;  %v2713_v34 = vld [vmem:[#allocation3 + $0x64] ss:$16 sps:$4 sm:$0xff]  }
  0x2e   :  { %v2716_v35 = vld [vmem:[#allocation3 + $0x6c] ss:$16 sps:$4 sm:$0xff]   ;;  %v2711_v36 = vld [vmem:[#allocation3 + $0x60] ss:$16 sps:$4 sm:$0xff]   ;;  %v2714_v37 = vld [vmem:[#allocation3 + $0x68] ss:$16 sps:$4 sm:$0xff]  }
  0x2f   :  { %v2719_v38 = vld [vmem:[#allocation3 + $0x84] ss:$16 sps:$4 sm:$0xff]   ;;  %v2722_v39 = vld [vmem:[#allocation3 + $0x8c] ss:$16 sps:$4 sm:$0xff]   ;;  %v2717_v40 = vld [vmem:[#allocation3 + $0x80] ss:$16 sps:$4 sm:$0xff]  }
  0x30   :  { %v2720_v41 = vld [vmem:[#allocation3 + $0x88] ss:$16 sps:$4 sm:$0xff]   ;;  %v2725_v42 = vld [vmem:[#allocation3 + $0xa4] ss:$16 sps:$4 sm:$0xff]   ;;  %v2728_v43 = vld [vmem:[#allocation3 + $0xac] ss:$16 sps:$4 sm:$0xff]  }
  0x31   :  { %v2723_v44 = vld [vmem:[#allocation3 + $0xa0] ss:$16 sps:$4 sm:$0xff]   ;;  %v2726_v45 = vld [vmem:[#allocation3 + $0xa8] ss:$16 sps:$4 sm:$0xff]   ;;  %v2731_v46 = vld [vmem:[#allocation3 + $0xc4] ss:$16 sps:$4 sm:$0xff]  }
  0x32   :  { %v2734_v47 = vld [vmem:[#allocation3 + $0xcc] ss:$16 sps:$4 sm:$0xff]   ;;  %v2729_v48 = vld [vmem:[#allocation3 + $0xc0] ss:$16 sps:$4 sm:$0xff]   ;;  %v2732_v49 = vld [vmem:[#allocation3 + $0xc8] ss:$16 sps:$4 sm:$0xff]  }
  0x33   :  { %v2737_v50 = vld [vmem:[#allocation3 + $0xe4] ss:$16 sps:$4 sm:$0xff]   ;;  %v2740_v51 = vld [vmem:[#allocation3 + $0xec] ss:$16 sps:$4 sm:$0xff]   ;;  %v2735_v52 = vld [vmem:[#allocation3 + $0xe0] ss:$16 sps:$4 sm:$0xff]  }
  0x34   :  { %v2738_v53 = vld [vmem:[#allocation3 + $0xe8] ss:$16 sps:$4 sm:$0xff]   ;;  %v2743_v54 = vld [vmem:[#allocation3 + $0x104] ss:$16 sps:$4 sm:$0xff]   ;;  %v2746_v55 = vld [vmem:[#allocation3 + $0x10c] ss:$16 sps:$4 sm:$0xff]  }
  0x35   :  { %v2741_v56 = vld [vmem:[#allocation3 + $0x100] ss:$16 sps:$4 sm:$0xff]   ;;  %v2744_v57 = vld [vmem:[#allocation3 + $0x108] ss:$16 sps:$4 sm:$0xff]   ;;  %v2749_v58 = vld [vmem:[#allocation3 + $0x124] ss:$16 sps:$4 sm:$0xff]  }
  0x36   :  { %v2752_v59 = vld [vmem:[#allocation3 + $0x12c] ss:$16 sps:$4 sm:$0xff]   ;;  %v2747_v60 = vld [vmem:[#allocation3 + $0x120] ss:$16 sps:$4 sm:$0xff]   ;;  %v2750_v61 = vld [vmem:[#allocation3 + $0x128] ss:$16 sps:$4 sm:$0xff]  }
  0x37   :  { %v2755_v62 = vld [vmem:[#allocation3 + $0x144] ss:$16 sps:$4 sm:$0xff]   ;;  %v2758_v63 = vld [vmem:[#allocation3 + $0x14c] ss:$16 sps:$4 sm:$0xff]   ;;  %v2756_v1 = vld [vmem:[#allocation3 + $0x148] ss:$16 sps:$4 sm:$0xff]  }
  0x38   :  { %v2761_v2 = vld [vmem:[#allocation3 + $0x164] ss:$16 sps:$4 sm:$0xff]   ;;  %v2764_v3 = vld [vmem:[#allocation3 + $0x16c] ss:$16 sps:$4 sm:$0xff]   ;;  %v2759_v4 = vld [vmem:[#allocation3 + $0x160] ss:$16 sps:$4 sm:$0xff]  }
  0x39   :  { %v2762_v5 = vld [vmem:[#allocation3 + $0x168] ss:$16 sps:$4 sm:$0xff]   ;;  %v2767_v6 = vld [vmem:[#allocation3 + $0x184] ss:$16 sps:$4 sm:$0xff]   ;;  %v2770_v7 = vld [vmem:[#allocation3 + $0x18c] ss:$16 sps:$4 sm:$0xff]  }
  0x3a   :  { %v2765_v8 = vld [vmem:[#allocation3 + $0x180] ss:$16 sps:$4 sm:$0xff]   ;;  %v2768_v9 = vld [vmem:[#allocation3 + $0x188] ss:$16 sps:$4 sm:$0xff]   ;;  %v2773_v10 = vld [vmem:[#allocation3 + $0x1a4] ss:$16 sps:$4 sm:$0xff]  }
  0xa8   :  { %v65_v13 = vpop.permute.xlu0 %64  ;;  %v71_v14 = vpop.permute.xlu1 %70 }
  0xa9   :  { %vm75_vm0 = vcmp.eq.s32.totalorder %v62_v12, %v65_v13  ;;  %vm77_vm3 = vcmp.eq.s32.totalorder %v62_v12, %v71_v14  ;;  %v2771_v13 = vld [vmem:[#allocation3 + $0x1a0] ss:$16 sps:$4 sm:$0xff]   ;;  %v2774_v14 = vld [vmem:[#allocation3 + $0x1a8] ss:$16 sps:$4 sm:$0xff]  }
  0xaa   :  { %v2360_v18 = vsel %vm75_vm0, 1.0, %v3154_v17  ;;  %v2362_v25 = vsel %vm77_vm3, 1.0, %v3154_v17 }
  0xac   :  { %v68_v15 = vpop.permute.xlu0 %67  ;;  %v74_v16 = vpop.permute.xlu1 %73 }
  0xad   :  { %vm76_vm1 = vcmp.eq.s32.totalorder %v62_v12, %v68_v15  ;;  %vm78_vm4 = vcmp.eq.s32.totalorder %v62_v12, %v74_v16  ;;  %v2776_v12 = vld [vmem:[#allocation3 + $0x1ac] ss:$16 sps:$4 sm:$0xff]   ;;  %v2779_v15 = vld [vmem:[#allocation3 + $0x1c4] ss:$16 sps:$4 sm:$0xff]  }
  0xae   :  { %v2361_v19 = vsel %vm76_vm1, 1.0, %v3154_v17  ;;  %v2363_v26 = vsel %vm78_vm4, 1.0, %v3154_v17  ;;  %v2782_v16 = vld [vmem:[#allocation3 + $0x1cc] ss:$16 sps:$4 sm:$0xff]   ;;  %v2777_v17 = vld [vmem:[#allocation3 + $0x1c0] ss:$16 sps:$4 sm:$0xff]  }
  0xaf   :  { %v87_v20 = vpack.c.bf16 %v2361_v19, %v2360_v18  ;;  %v88_v31 = vpack.c.bf16 %v2363_v26, %v2362_v25  ;;  %v2780_v18 = vld [vmem:[#allocation3 + $0x1c8] ss:$16 sps:$4 sm:$0xff]   ;;  %v2785_v19 = vld [vmem:[#allocation3 + $0x1e4] ss:$16 sps:$4 sm:$0xff]  }
  0xb1   :  { %2368 = vmatmul.mubr.msk.bf16.vlgmr.msra.gmra.mrb[0].mxu0 %vm113_vm2, %v87_v20  ;;  %2370 = vmatmul.mubr.msk.bf16.vlgmr.msra.gmra.mrb[0].mxu1 %vm113_vm2, %v87_v20  ;;  %v2788_v20 = vld [vmem:[#allocation3 + $0x1ec] ss:$16 sps:$4 sm:$0xff]  }
  0xb2   :  { %162 = vmatprep.mubr.bf16.mxu0 %v3153_v0  ;;  %215 = vmatprep.mubr.bf16.mxu1 %v3153_v0  ;;  %v2753_v0 = vld [vmem:[#allocation3 + $0x140] ss:$16 sps:$4 sm:$0xff]  }
  0xb3   :  { %1079 = vmatpush1.bf16.msra.mxu0 %v2693_v21  ;;  %1185 = vmatpush1.bf16.msra.mxu1 %v2696_v22  ;;  %v2783_v21 = vld [vmem:[#allocation3 + $0x1e0] ss:$16 sps:$4 sm:$0xff]   ;;  %v2786_v22 = vld [vmem:[#allocation3 + $0x1e8] ss:$16 sps:$4 sm:$0xff]  }
  0xb4   :  { %1080 = vmatprep.subr.bf16.mxu0 %v2701_v23  ;;  %1186 = vmatprep.subr.bf16.mxu1 %v2704_v24  ;;  %v2791_v23 = vld [vmem:[#allocation3 + $0x204] ss:$16 sps:$4 sm:$0xff]   ;;  %v2794_v24 = vld [vmem:[#allocation3 + $0x20c] ss:$16 sps:$4 sm:$0xff]  }
  0xb7   :  { %1081 = vmatpush1.bf16.msra.mxu0 %v2699_v27  ;;  %1187 = vmatpush1.bf16.msra.mxu1 %v2702_v28 }
  0xb8   :  { %1082 = vmatprep.subr.bf16.mxu0 %v2707_v29  ;;  %1188 = vmatprep.subr.bf16.mxu1 %v2710_v30 }
  0xb9   :  { %2369 = vmatmul.mubr.msk.bf16.gmra.mrb[4].mxu0 %vm113_vm2, %v88_v31  ;;  %2371 = vmatmul.mubr.msk.bf16.gmra.mrb[4].mxu1 %vm113_vm2, %v88_v31 }
  0xbb   :  { %1083 = vmatpush1.bf16.msra.mxu0 %v2705_v32  ;;  %1189 = vmatpush1.bf16.msra.mxu1 %v2708_v33 }
  0xbc   :  { %1084 = vmatprep.subr.bf16.mxu0 %v2713_v34  ;;  %1190 = vmatprep.subr.bf16.mxu1 %v2716_v35 }
  0xbf   :  { %1085 = vmatpush1.bf16.msra.mxu0 %v2711_v36  ;;  %1191 = vmatpush1.bf16.msra.mxu1 %v2714_v37  ;;  %v2789_v37 = vld [vmem:[#allocation3 + $0x200] ss:$16 sps:$4 sm:$0xff]  }
  0xc0   :  { %1086 = vmatprep.subr.bf16.mxu0 %v2719_v38  ;;  %1192 = vmatprep.subr.bf16.mxu1 %v2722_v39  ;;  %v2792_v38 = vld [vmem:[#allocation3 + $0x208] ss:$16 sps:$4 sm:$0xff]   ;;  %v2797_v39 = vld [vmem:[#allocation3 + $0x224] ss:$16 sps:$4 sm:$0xff]  }
  0xc3   :  { %1087 = vmatpush1.bf16.msra.mxu0 %v2717_v40  ;;  %1193 = vmatpush1.bf16.msra.mxu1 %v2720_v41  ;;  %v2800_v40 = vld [vmem:[#allocation3 + $0x22c] ss:$16 sps:$4 sm:$0xff]  }
  0xc4   :  { %1088 = vmatprep.subr.bf16.mxu0 %v2725_v42  ;;  %1194 = vmatprep.subr.bf16.mxu1 %v2728_v43  ;;  %v2795_v42 = vld [vmem:[#allocation3 + $0x220] ss:$16 sps:$4 sm:$0xff]   ;;  %v2798_v43 = vld [vmem:[#allocation3 + $0x228] ss:$16 sps:$4 sm:$0xff]  }
  0xc7   :  { %1089 = vmatpush1.bf16.msra.mxu0 %v2723_v44  ;;  %1195 = vmatpush1.bf16.msra.mxu1 %v2726_v45 }
  0xc8   :  { %1090 = vmatprep.subr.bf16.mxu0 %v2731_v46  ;;  %1196 = vmatprep.subr.bf16.mxu1 %v2734_v47  ;;  %v2803_v46 = vld [vmem:[#allocation3 + $0x244] ss:$16 sps:$4 sm:$0xff]   ;;  %v2806_v47 = vld [vmem:[#allocation3 + $0x24c] ss:$16 sps:$4 sm:$0xff]  }
  0xcb   :  { %1091 = vmatpush1.bf16.msra.mxu0 %v2729_v48  ;;  %1197 = vmatpush1.bf16.msra.mxu1 %v2732_v49 }
  0xcc   :  { %1092 = vmatprep.subr.bf16.mxu0 %v2737_v50  ;;  %1198 = vmatprep.subr.bf16.mxu1 %v2740_v51 }
  0xcf   :  { %1093 = vmatpush1.bf16.msra.mxu0 %v2735_v52  ;;  %1199 = vmatpush1.bf16.msra.mxu1 %v2738_v53 }
  0xd0   :  { %1094 = vmatprep.subr.bf16.mxu0 %v2743_v54  ;;  %1200 = vmatprep.subr.bf16.mxu1 %v2746_v55 }
  0xd3   :  { %1095 = vmatpush1.bf16.msra.mxu0 %v2741_v56  ;;  %1201 = vmatpush1.bf16.msra.mxu1 %v2744_v57  ;;  %v2801_v56 = vld [vmem:[#allocation3 + $0x240] ss:$16 sps:$4 sm:$0xff]   ;;  %v2804_v57 = vld [vmem:[#allocation3 + $0x248] ss:$16 sps:$4 sm:$0xff]  }
  0xd4   :  { %1096 = vmatprep.subr.bf16.mxu0 %v2749_v58  ;;  %1202 = vmatprep.subr.bf16.mxu1 %v2752_v59  ;;  %v2809_v59 = vld [vmem:[#allocation3 + $0x264] ss:$16 sps:$4 sm:$0xff]  }
  0xd7   :  { %1097 = vmatpush1.bf16.msra.mxu0 %v2747_v60  ;;  %1203 = vmatpush1.bf16.msra.mxu1 %v2750_v61  ;;  %v2812_v60 = vld [vmem:[#allocation3 + $0x26c] ss:$16 sps:$4 sm:$0xff]   ;;  %v2807_v61 = vld [vmem:[#allocation3 + $0x260] ss:$16 sps:$4 sm:$0xff]  }
  0xd8   :  { %1098 = vmatprep.subr.bf16.mxu0 %v2755_v62  ;;  %1204 = vmatprep.subr.bf16.mxu1 %v2758_v63  ;;  %v2810_v62 = vld [vmem:[#allocation3 + $0x268] ss:$16 sps:$4 sm:$0xff]   ;;  %v2815_v63 = vld [vmem:[#allocation3 + $0x284] ss:$16 sps:$4 sm:$0xff]  }
  0xdb   :  { %1099 = vmatpush1.bf16.msra.mxu0 %v2753_v0  ;;  %1205 = vmatpush1.bf16.msra.mxu1 %v2756_v1  ;;  %v2818_v0 = vld [vmem:[#allocation3 + $0x28c] ss:$16 sps:$4 sm:$0xff]   ;;  %v2813_v1 = vld [vmem:[#allocation3 + $0x280] ss:$16 sps:$4 sm:$0xff]  }
  0xdc   :  { %1100 = vmatprep.subr.bf16.mxu0 %v2761_v2  ;;  %1206 = vmatprep.subr.bf16.mxu1 %v2764_v3  ;;  %v2816_v2 = vld [vmem:[#allocation3 + $0x288] ss:$16 sps:$4 sm:$0xff]   ;;  %v2821_v3 = vld [vmem:[#allocation3 + $0x2a4] ss:$16 sps:$4 sm:$0xff]  }
  0xdf   :  { %1101 = vmatpush1.bf16.msra.mxu0 %v2759_v4  ;;  %1207 = vmatpush1.bf16.msra.mxu1 %v2762_v5  ;;  %v2824_v4 = vld [vmem:[#allocation3 + $0x2ac] ss:$16 sps:$4 sm:$0xff]   ;;  %v2819_v5 = vld [vmem:[#allocation3 + $0x2a0] ss:$16 sps:$4 sm:$0xff]  }
  0xe0   :  { %1102 = vmatprep.subr.bf16.mxu0 %v2767_v6  ;;  %1208 = vmatprep.subr.bf16.mxu1 %v2770_v7  ;;  %v2822_v6 = vld [vmem:[#allocation3 + $0x2a8] ss:$16 sps:$4 sm:$0xff]   ;;  %v2827_v7 = vld [vmem:[#allocation3 + $0x2c4] ss:$16 sps:$4 sm:$0xff]  }
  0xe3   :  { %1103 = vmatpush1.bf16.msra.mxu0 %v2765_v8  ;;  %1209 = vmatpush1.bf16.msra.mxu1 %v2768_v9  ;;  %v2830_v8 = vld [vmem:[#allocation3 + $0x2cc] ss:$16 sps:$4 sm:$0xff]   ;;  %v2825_v9 = vld [vmem:[#allocation3 + $0x2c0] ss:$16 sps:$4 sm:$0xff]  }
  0xe4   :  { %1104 = vmatprep.subr.bf16.mxu0 %v2773_v10  ;;  %1210 = vmatprep.subr.bf16.mxu1 %v2776_v12  ;;  %v2828_v10 = vld [vmem:[#allocation3 + $0x2c8] ss:$16 sps:$4 sm:$0xff]   ;;  %v2833_v12 = vld [vmem:[#allocation3 + $0x2e4] ss:$16 sps:$4 sm:$0xff]  }
  0xe7   :  { %1105 = vmatpush1.bf16.msra.mxu0 %v2771_v13  ;;  %1211 = vmatpush1.bf16.msra.mxu1 %v2774_v14  ;;  %v2836_v13 = vld [vmem:[#allocation3 + $0x2ec] ss:$16 sps:$4 sm:$0xff]   ;;  %v2831_v14 = vld [vmem:[#allocation3 + $0x2e0] ss:$16 sps:$4 sm:$0xff]  }
  0xe8   :  { %1106 = vmatprep.subr.bf16.mxu0 %v2779_v15  ;;  %1212 = vmatprep.subr.bf16.mxu1 %v2782_v16  ;;  %v2834_v15 = vld [vmem:[#allocation3 + $0x2e8] ss:$16 sps:$4 sm:$0xff]   ;;  %v2839_v16 = vld [vmem:[#allocation3 + $0x304] ss:$16 sps:$4 sm:$0xff]  }
  0xeb   :  { %1107 = vmatpush1.bf16.msra.mxu0 %v2777_v17  ;;  %1213 = vmatpush1.bf16.msra.mxu1 %v2780_v18  ;;  %v2842_v17 = vld [vmem:[#allocation3 + $0x30c] ss:$16 sps:$4 sm:$0xff]   ;;  %v2837_v18 = vld [vmem:[#allocation3 + $0x300] ss:$16 sps:$4 sm:$0xff]  }
  0xec   :  { %1108 = vmatprep.subr.bf16.mxu0 %v2785_v19  ;;  %1214 = vmatprep.subr.bf16.mxu1 %v2788_v20  ;;  %v2840_v19 = vld [vmem:[#allocation3 + $0x308] ss:$16 sps:$4 sm:$0xff]   ;;  %v2845_v20 = vld [vmem:[#allocation3 + $0x324] ss:$16 sps:$4 sm:$0xff]  }
  0xef   :  { %1109 = vmatpush1.bf16.msra.mxu0 %v2783_v21  ;;  %1215 = vmatpush1.bf16.msra.mxu1 %v2786_v22  ;;  %v2848_v21 = vld [vmem:[#allocation3 + $0x32c] ss:$16 sps:$4 sm:$0xff]   ;;  %v2843_v22 = vld [vmem:[#allocation3 + $0x320] ss:$16 sps:$4 sm:$0xff]  }
  0xf0   :  { %1131 = vmatprep.subr.bf16.mxu0 %v2791_v23  ;;  %1237 = vmatprep.subr.bf16.mxu1 %v2794_v24  ;;  %v2846_v23 = vld [vmem:[#allocation3 + $0x328] ss:$16 sps:$4 sm:$0xff]   ;;  %v2851_v24 = vld [vmem:[#allocation3 + $0x344] ss:$16 sps:$4 sm:$0xff]  }
 0x184   :  { %v154_v25 = vpop.f32.mrb[0].mxu0  ;;  %v207_v26 = vpop.f32.mrb[0].mxu1 }
 0x185   :  { %v156_v27 = vpop.f32.mrb[1].mxu0  ;;  %v209_v28 = vpop.f32.mrb[1].mxu1 }
 0x186   :  { %v158_v29 = vpop.f32.mrb[2].mxu0  ;;  %v211_v30 = vpop.f32.mrb[2].mxu1 }
 0x187   :  { %v226_v31 = vpack.c.bf16 %v158_v29, %v154_v25  ;;  %v3246_v32 = vpack.c.bf16 %v211_v30, %v207_v26  ;;  %v160_v33 = vpop.f32.mrb[3].mxu0  ;;  %v213_v34 = vpop.f32.mrb[3].mxu1  ;;  %v2854_v25 = vld [vmem:[#allocation3 + $0x34c] ss:$16 sps:$4 sm:$0xff]   ;;  %v2849_v26 = vld [vmem:[#allocation3 + $0x340] ss:$16 sps:$4 sm:$0xff]  }
 0x188   :  { %v227_v35 = vpack.c.bf16 %v160_v33, %v156_v27  ;;  %v229_v36 = vpack.c.bf16 %v213_v34, %v209_v28  ;;  %v2852_v27 = vld [vmem:[#allocation3 + $0x348] ss:$16 sps:$4 sm:$0xff]   ;;  %v2857_v28 = vld [vmem:[#allocation3 + $0x364] ss:$16 sps:$4 sm:$0xff]   ;;  %v2860_v29 = vld [vmem:[#allocation3 + $0x36c] ss:$16 sps:$4 sm:$0xff]  }
 0x189   :  { %v2855_v30 = vld [vmem:[#allocation3 + $0x360] ss:$16 sps:$4 sm:$0xff]   ;;  %v2863_v33 = vld [vmem:[#allocation3 + $0x384] ss:$16 sps:$4 sm:$0xff]   ;;  %v2866_v34 = vld [vmem:[#allocation3 + $0x38c] ss:$16 sps:$4 sm:$0xff]  }
 0x18a   :  { %1110 = vmatprep.mubr.bf16.mxu0 %v227_v35  ;;  %1216 = vmatprep.mubr.bf16.mxu1 %v227_v35  ;;  %v2861_v35 = vld [vmem:[#allocation3 + $0x380] ss:$16 sps:$4 sm:$0xff]  }
 0x18b   :  { %1111 = vmatmul.mubr.bf16.vlgmr.msra.gmra.mrb[8].mxu0 %v226_v31  ;;  %1217 = vmatmul.mubr.bf16.vlgmr.msra.gmra.mrb[8].mxu1 %v226_v31  ;;  %v2858_v31 = vld [vmem:[#allocation3 + $0x368] ss:$16 sps:$4 sm:$0xff]  }
 0x18c   :  { %1132 = vmatpush1.bf16.msra.mxu0 %v2789_v37  ;;  %1238 = vmatpush1.bf16.msra.mxu1 %v2792_v38  ;;  %v164_v41 = vpop.f32.mrb[4].mxu0  ;;  %v217_v44 = vpop.f32.mrb[4].mxu1  ;;  %v2869_v37 = vld [vmem:[#allocation3 + $0x3a4] ss:$16 sps:$4 sm:$0xff]   ;;  %v2872_v38 = vld [vmem:[#allocation3 + $0x3ac] ss:$16 sps:$4 sm:$0xff]  }
 0x18d   :  { %v166_v45 = vpop.f32.mrb[5].mxu0  ;;  %1133 = vmatprep.subr.bf16.mxu0 %v2797_v39  ;;  %1239 = vmatprep.subr.bf16.mxu1 %v2800_v40  ;;  %v219_v48 = vpop.f32.mrb[5].mxu1  ;;  %v2867_v39 = vld [vmem:[#allocation3 + $0x3a0] ss:$16 sps:$4 sm:$0xff]   ;;  %v2870_v40 = vld [vmem:[#allocation3 + $0x3a8] ss:$16 sps:$4 sm:$0xff]  }
 0x18e   :  { %v168_v49 = vpop.f32.mrb[6].mxu0  ;;  %v221_v50 = vpop.f32.mrb[6].mxu1 }
 0x18f   :  { %v230_v51 = vpack.c.bf16 %v168_v49, %v164_v41  ;;  %v170_v52 = vpop.f32.mrb[7].mxu0  ;;  %v3248_v53 = vpack.c.bf16 %v221_v50, %v217_v44  ;;  %v223_v54 = vpop.f32.mrb[7].mxu1  ;;  %v2875_v41 = vld [vmem:[#allocation3 + $0x3c4] ss:$16 sps:$4 sm:$0xff]   ;;  %v2876_v44 = vld [vmem:[#allocation3 + $0x3c8] ss:$16 sps:$4 sm:$0xff]  }
 0x190   :  { %v231_v55 = vpack.c.bf16 %v170_v52, %v166_v45  ;;  %1134 = vmatpush1.bf16.msra.mxu0 %v2795_v42  ;;  %1240 = vmatpush1.bf16.msra.mxu1 %v2798_v43  ;;  %v3250_v58 = vpack.c.bf16 %v223_v54, %v219_v48  ;;  %v2878_v42 = vld [vmem:[#allocation3 + $0x3cc] ss:$16 sps:$4 sm:$0xff]   ;;  %v2873_v43 = vld [vmem:[#allocation3 + $0x3c0] ss:$16 sps:$4 sm:$0xff]   ;;  %v2881_v45 = vld [vmem:[#allocation3 + $0x3e4] ss:$16 sps:$4 sm:$0xff]  }
 0x191   :  { %1135 = vmatprep.subr.bf16.mxu0 %v2803_v46  ;;  %1241 = vmatprep.subr.bf16.mxu1 %v2806_v47  ;;  %v2884_v46 = vld [vmem:[#allocation3 + $0x3ec] ss:$16 sps:$4 sm:$0xff]   ;;  %v2879_v47 = vld [vmem:[#allocation3 + $0x3e0] ss:$16 sps:$4 sm:$0xff]   ;;  %v2882_v48 = vld [vmem:[#allocation3 + $0x3e8] ss:$16 sps:$4 sm:$0xff]  }
 0x192   :  { %1120 = vmatprep.mubr.bf16.mxu0 %v231_v55  ;;  %1226 = vmatprep.mubr.bf16.mxu1 %v231_v55  ;;  %v2887_v49 = vld [vmem:[#allocation6 + $0x4] ss:$16 sps:$4 sm:$0xff]   ;;  %v2890_v50 = vld [vmem:[#allocation6 + $0xc] ss:$16 sps:$4 sm:$0xff]   ;;  %v2888_v52 = vld [vmem:[#allocation6 + $0x8] ss:$16 sps:$4 sm:$0xff]  }
 0x193   :  { %1121 = vmatmul.mubr.bf16.gmra.mrb[12].mxu0 %v230_v51  ;;  %1227 = vmatmul.mubr.bf16.gmra.mrb[12].mxu1 %v230_v51  ;;  %v2885_v51 = vld [vmem:[#allocation6] ss:$16 sps:$4 sm:$0xff]   ;;  %v2893_v54 = vld [vmem:[#allocation6 + $0x24] ss:$16 sps:$4 sm:$0xff]   ;;  %v2896_v55 = vld [vmem:[#allocation6 + $0x2c] ss:$16 sps:$4 sm:$0xff]  }
 0x194   :  { %1136 = vmatpush1.bf16.msra.mxu0 %v2801_v56  ;;  %1242 = vmatpush1.bf16.msra.mxu1 %v2804_v57  ;;  %v2891_v56 = vld [vmem:[#allocation6 + $0x20] ss:$16 sps:$4 sm:$0xff]   ;;  %v2894_v57 = vld [vmem:[#allocation6 + $0x28] ss:$16 sps:$4 sm:$0xff]  }
 0x195   :  { %1163 = vmatprep.mubr.bf16.mxu0 %v229_v36  ;;  %1269 = vmatprep.mubr.bf16.mxu1 %v229_v36  ;;  %v2864_v36 = vld [vmem:[#allocation3 + $0x388] ss:$16 sps:$4 sm:$0xff]  }
 0x196   :  { %1137 = vmatprep.subr.bf16.mxu0 %v2809_v59  ;;  %1243 = vmatprep.subr.bf16.mxu1 %v2812_v60  ;;  %v2899_v59 = vld [vmem:[#allocation6 + $0x44] ss:$16 sps:$4 sm:$0xff]   ;;  %v2902_v60 = vld [vmem:[#allocation6 + $0x4c] ss:$16 sps:$4 sm:$0xff]  }
 0x198   :  { %1138 = vmatpush1.bf16.msra.mxu0 %v2807_v61  ;;  %1244 = vmatpush1.bf16.msra.mxu1 %v2810_v62  ;;  %v2897_v61 = vld [vmem:[#allocation6 + $0x40] ss:$16 sps:$4 sm:$0xff]   ;;  %v2900_v62 = vld [vmem:[#allocation6 + $0x48] ss:$16 sps:$4 sm:$0xff]  }
 0x199   :  { %1139 = vmatprep.subr.bf16.mxu0 %v2815_v63  ;;  %1245 = vmatprep.subr.bf16.mxu1 %v2818_v0  ;;  %v2905_v63 = vld [vmem:[#allocation6 + $0x64] ss:$16 sps:$4 sm:$0xff]   ;;  %v2906_v0 = vld [vmem:[#allocation6 + $0x68] ss:$16 sps:$4 sm:$0xff]  }
 0x19c   :  { %1140 = vmatpush1.bf16.msra.mxu0 %v2813_v1  ;;  %1246 = vmatpush1.bf16.msra.mxu1 %v2816_v2  ;;  %v2911_v1 = vld [vmem:[#allocation6 + $0x84] ss:$16 sps:$4 sm:$0xff]   ;;  %v2914_v2 = vld [vmem:[#allocation6 + $0x8c] ss:$16 sps:$4 sm:$0xff]  }
 0x19d   :  { %1141 = vmatprep.subr.bf16.mxu0 %v2821_v3  ;;  %1247 = vmatprep.subr.bf16.mxu1 %v2824_v4  ;;  %v2909_v3 = vld [vmem:[#allocation6 + $0x80] ss:$16 sps:$4 sm:$0xff]   ;;  %v2912_v4 = vld [vmem:[#allocation6 + $0x88] ss:$16 sps:$4 sm:$0xff]  }
 0x1a0   :  { %1142 = vmatpush1.bf16.msra.mxu0 %v2819_v5  ;;  %1248 = vmatpush1.bf16.msra.mxu1 %v2822_v6  ;;  %v2917_v5 = vld [vmem:[#allocation6 + $0xa4] ss:$16 sps:$4 sm:$0xff]   ;;  %v2920_v6 = vld [vmem:[#allocation6 + $0xac] ss:$16 sps:$4 sm:$0xff]  }
 0x1a1   :  { %1143 = vmatprep.subr.bf16.mxu0 %v2827_v7  ;;  %1249 = vmatprep.subr.bf16.mxu1 %v2830_v8  ;;  %v2915_v7 = vld [vmem:[#allocation6 + $0xa0] ss:$16 sps:$4 sm:$0xff]   ;;  %v2923_v8 = vld [vmem:[#allocation6 + $0xc4] ss:$16 sps:$4 sm:$0xff]  }
 0x1a4   :  { %1144 = vmatpush1.bf16.msra.mxu0 %v2825_v9  ;;  %1250 = vmatpush1.bf16.msra.mxu1 %v2828_v10  ;;  %v2926_v9 = vld [vmem:[#allocation6 + $0xcc] ss:$16 sps:$4 sm:$0xff]   ;;  %v2921_v10 = vld [vmem:[#allocation6 + $0xc0] ss:$16 sps:$4 sm:$0xff]  }
 0x1a5   :  { %1145 = vmatprep.subr.bf16.mxu0 %v2833_v12  ;;  %1251 = vmatprep.subr.bf16.mxu1 %v2836_v13  ;;  %v2924_v12 = vld [vmem:[#allocation6 + $0xc8] ss:$16 sps:$4 sm:$0xff]   ;;  %v2929_v13 = vld [vmem:[#allocation6 + $0xe4] ss:$16 sps:$4 sm:$0xff]  }
 0x1a8   :  { %1146 = vmatpush1.bf16.msra.mxu0 %v2831_v14  ;;  %1252 = vmatpush1.bf16.msra.mxu1 %v2834_v15  ;;  %v2932_v14 = vld [vmem:[#allocation6 + $0xec] ss:$16 sps:$4 sm:$0xff]   ;;  %v2927_v15 = vld [vmem:[#allocation6 + $0xe0] ss:$16 sps:$4 sm:$0xff]  }
 0x1a9   :  { %1147 = vmatprep.subr.bf16.mxu0 %v2839_v16  ;;  %1253 = vmatprep.subr.bf16.mxu1 %v2842_v17  ;;  %v2930_v16 = vld [vmem:[#allocation6 + $0xe8] ss:$16 sps:$4 sm:$0xff]   ;;  %v2935_v17 = vld [vmem:[#allocation6 + $0x104] ss:$16 sps:$4 sm:$0xff]  }
 0x1ac   :  { %1148 = vmatpush1.bf16.msra.mxu0 %v2837_v18  ;;  %1254 = vmatpush1.bf16.msra.mxu1 %v2840_v19  ;;  %v2938_v18 = vld [vmem:[#allocation6 + $0x10c] ss:$16 sps:$4 sm:$0xff]   ;;  %v2933_v19 = vld [vmem:[#allocation6 + $0x100] ss:$16 sps:$4 sm:$0xff]  }
 0x1ad   :  { %1149 = vmatprep.subr.bf16.mxu0 %v2845_v20  ;;  %1255 = vmatprep.subr.bf16.mxu1 %v2848_v21  ;;  %v2936_v20 = vld [vmem:[#allocation6 + $0x108] ss:$16 sps:$4 sm:$0xff]   ;;  %v2941_v21 = vld [vmem:[#allocation6 + $0x124] ss:$16 sps:$4 sm:$0xff]  }
 0x1b0   :  { %1150 = vmatpush1.bf16.msra.mxu0 %v2843_v22  ;;  %1256 = vmatpush1.bf16.msra.mxu1 %v2846_v23  ;;  %v2944_v22 = vld [vmem:[#allocation6 + $0x12c] ss:$16 sps:$4 sm:$0xff]   ;;  %v2939_v23 = vld [vmem:[#allocation6 + $0x120] ss:$16 sps:$4 sm:$0xff]  }
 0x1b1   :  { %1151 = vmatprep.subr.bf16.mxu0 %v2851_v24  ;;  %1257 = vmatprep.subr.bf16.mxu1 %v2854_v25  ;;  %v2942_v24 = vld [vmem:[#allocation6 + $0x128] ss:$16 sps:$4 sm:$0xff]   ;;  %v2947_v25 = vld [vmem:[#allocation6 + $0x144] ss:$16 sps:$4 sm:$0xff]  }
 0x1b4   :  { %1152 = vmatpush1.bf16.msra.mxu0 %v2849_v26  ;;  %1258 = vmatpush1.bf16.msra.mxu1 %v2852_v27  ;;  %v2950_v26 = vld [vmem:[#allocation6 + $0x14c] ss:$16 sps:$4 sm:$0xff]   ;;  %v2945_v27 = vld [vmem:[#allocation6 + $0x140] ss:$16 sps:$4 sm:$0xff]  }
 0x1b5   :  { %1153 = vmatprep.subr.bf16.mxu0 %v2857_v28  ;;  %1259 = vmatprep.subr.bf16.mxu1 %v2860_v29  ;;  %v2948_v28 = vld [vmem:[#allocation6 + $0x148] ss:$16 sps:$4 sm:$0xff]   ;;  %v2953_v29 = vld [vmem:[#allocation6 + $0x164] ss:$16 sps:$4 sm:$0xff]  }
 0x1b8   :  { %1154 = vmatpush1.bf16.msra.mxu0 %v2855_v30  ;;  %1260 = vmatpush1.bf16.msra.mxu1 %v2858_v31  ;;  %v2956_v30 = vld [vmem:[#allocation6 + $0x16c] ss:$16 sps:$4 sm:$0xff]   ;;  %v2951_v31 = vld [vmem:[#allocation6 + $0x160] ss:$16 sps:$4 sm:$0xff]  }
 0x1b9   :  { %1155 = vmatprep.subr.bf16.mxu0 %v2863_v33  ;;  %1261 = vmatprep.subr.bf16.mxu1 %v2866_v34  ;;  %v2954_v33 = vld [vmem:[#allocation6 + $0x168] ss:$16 sps:$4 sm:$0xff]   ;;  %v2959_v34 = vld [vmem:[#allocation6 + $0x184] ss:$16 sps:$4 sm:$0xff]  }
 0x1bc   :  { %1156 = vmatpush1.bf16.msra.mxu0 %v2861_v35  ;;  %1262 = vmatpush1.bf16.msra.mxu1 %v2864_v36  ;;  %v2962_v35 = vld [vmem:[#allocation6 + $0x18c] ss:$16 sps:$4 sm:$0xff]   ;;  %v2957_v36 = vld [vmem:[#allocation6 + $0x180] ss:$16 sps:$4 sm:$0xff]  }
 0x1bd   :  { %1157 = vmatprep.subr.bf16.mxu0 %v2869_v37  ;;  %1263 = vmatprep.subr.bf16.mxu1 %v2872_v38  ;;  %v2960_v37 = vld [vmem:[#allocation6 + $0x188] ss:$16 sps:$4 sm:$0xff]   ;;  %v2965_v38 = vld [vmem:[#allocation6 + $0x1a4] ss:$16 sps:$4 sm:$0xff]  }
 0x1c0   :  { %1158 = vmatpush1.bf16.msra.mxu0 %v2867_v39  ;;  %1264 = vmatpush1.bf16.msra.mxu1 %v2870_v40  ;;  %v2968_v39 = vld [vmem:[#allocation6 + $0x1ac] ss:$16 sps:$4 sm:$0xff]   ;;  %v2963_v40 = vld [vmem:[#allocation6 + $0x1a0] ss:$16 sps:$4 sm:$0xff]  }
 0x1c1   :  { %1159 = vmatprep.subr.bf16.mxu0 %v2875_v41  ;;  %1265 = vmatprep.subr.bf16.mxu1 %v2878_v42  ;;  %v2966_v41 = vld [vmem:[#allocation6 + $0x1a8] ss:$16 sps:$4 sm:$0xff]   ;;  %v2971_v42 = vld [vmem:[#allocation6 + $0x1c4] ss:$16 sps:$4 sm:$0xff]  }
 0x1c4   :  { %1160 = vmatpush1.bf16.msra.mxu0 %v2873_v43  ;;  %1266 = vmatpush1.bf16.msra.mxu1 %v2876_v44  ;;  %v2974_v43 = vld [vmem:[#allocation6 + $0x1cc] ss:$16 sps:$4 sm:$0xff]   ;;  %v2969_v44 = vld [vmem:[#allocation6 + $0x1c0] ss:$16 sps:$4 sm:$0xff]  }
 0x1c5   :  { %1161 = vmatprep.subr.bf16.mxu0 %v2881_v45  ;;  %1267 = vmatprep.subr.bf16.mxu1 %v2884_v46  ;;  %v2972_v45 = vld [vmem:[#allocation6 + $0x1c8] ss:$16 sps:$4 sm:$0xff]   ;;  %v2977_v46 = vld [vmem:[#allocation6 + $0x1e4] ss:$16 sps:$4 sm:$0xff]  }
 0x1c8   :  { %1162 = vmatpush1.bf16.msra.mxu0 %v2879_v47  ;;  %1268 = vmatpush1.bf16.msra.mxu1 %v2882_v48  ;;  %v2980_v47 = vld [vmem:[#allocation6 + $0x1ec] ss:$16 sps:$4 sm:$0xff]   ;;  %v2975_v48 = vld [vmem:[#allocation6 + $0x1e0] ss:$16 sps:$4 sm:$0xff]  }
 0x1c9   :  { %2098 = vmatprep.subr.bf16.mxu0 %v2887_v49  ;;  %2204 = vmatprep.subr.bf16.mxu1 %v2890_v50  ;;  %v2978_v49 = vld [vmem:[#allocation6 + $0x1e8] ss:$16 sps:$4 sm:$0xff]   ;;  %v2983_v50 = vld [vmem:[#allocation6 + $0x204] ss:$16 sps:$4 sm:$0xff]  }
 0x1cb   :  { %1164 = vmatmul.mubr.bf16.vlgmr.msra.gmra.mrb[8].mxu0 %v3246_v32  ;;  %1270 = vmatmul.mubr.bf16.vlgmr.msra.gmra.mrb[8].mxu1 %v3246_v32  ;;  %v2908_v32 = vld [vmem:[#allocation6 + $0x6c] ss:$16 sps:$4 sm:$0xff]  }
 0x1cc   :  { %1173 = vmatprep.mubr.bf16.mxu0 %v3250_v58  ;;  %1279 = vmatprep.mubr.bf16.mxu1 %v3250_v58  ;;  %v2903_v58 = vld [vmem:[#allocation6 + $0x60] ss:$16 sps:$4 sm:$0xff]  }
 0x1cd   :  { %2099 = vmatpush1.bf16.msra.mxu0 %v2885_v51  ;;  %2205 = vmatpush1.bf16.msra.mxu1 %v2888_v52  ;;  %v2986_v51 = vld [vmem:[#allocation6 + $0x20c] ss:$16 sps:$4 sm:$0xff]   ;;  %v3259_v52 = vshrl.u32 %v61_v11, 7 }
 0x1ce   :  { %2100 = vmatprep.subr.bf16.mxu0 %v2893_v54  ;;  %2206 = vmatprep.subr.bf16.mxu1 %v2896_v55 }
 0x1cf   :  { %v246_v54 = vsub.s32 0, %v3259_v52  ;;  %v254_v55 = vsub.s32 2, %v3259_v52 }
 0x1d1   :  { %2101 = vmatpush1.bf16.msra.mxu0 %v2891_v56  ;;  %2207 = vmatpush1.bf16.msra.mxu1 %v2894_v57  ;;  %v416_v56 = vld [vmem:[%s3314_s3] sm:$0xf]  ;;  %v250_v57 = vsub.s32 1, %v3259_v52 }
 0x1d2   :  { %2102 = vmatprep.subr.bf16.mxu0 %v2899_v59  ;;  %2208 = vmatprep.subr.bf16.mxu1 %v2902_v60  ;;  %v258_v59 = vsub.s32 3, %v3259_v52  ;;  %v421_v60 = vrot.slane %v416_v56, %v246_v54 }
 0x1d3   :  { %1174 = vmatmul.mubr.bf16.gmra.mrb[12].mxu0 %v3248_v53  ;;  %1280 = vmatmul.mubr.bf16.gmra.mrb[12].mxu1 %v3248_v53  ;;  %v2918_v53 = vld [vmem:[#allocation6 + $0xa8] ss:$16 sps:$4 sm:$0xff]   ;;  %v425_v11 = vrot.slane %v416_v56, %v250_v57 }
 0x1d5   :  { %2103 = vmatpush1.bf16.msra.mxu0 %v2897_v61  ;;  %2209 = vmatpush1.bf16.msra.mxu1 %v2900_v62  ;;  %v429_v61 = vrot.slane %v416_v56, %v254_v55  ;;  %v433_v62 = vrot.slane %v416_v56, %v258_v59 }
 0x1d6   :  { %2104 = vmatprep.subr.bf16.mxu0 %v2905_v63  ;;  %2210 = vmatprep.subr.bf16.mxu1 %v2908_v32 }
 0x1d9   :  { %2105 = vmatpush1.bf16.msra.mxu0 %v2903_v58  ;;  %2211 = vmatpush1.bf16.msra.mxu1 %v2906_v0 }
 0x1da   :  { %2106 = vmatprep.subr.bf16.mxu0 %v2911_v1  ;;  %2212 = vmatprep.subr.bf16.mxu1 %v2914_v2 }
 0x1dd   :  { %2107 = vmatpush1.bf16.msra.mxu0 %v2909_v3  ;;  %2213 = vmatpush1.bf16.msra.mxu1 %v2912_v4 }
 0x1de   :  { %2108 = vmatprep.subr.bf16.mxu0 %v2917_v5  ;;  %2214 = vmatprep.subr.bf16.mxu1 %v2920_v6 }
 0x1e1   :  { %2109 = vmatpush1.bf16.msra.mxu0 %v2915_v7  ;;  %2215 = vmatpush1.bf16.msra.mxu1 %v2918_v53 }
 0x1e2   :  { %2110 = vmatprep.subr.bf16.mxu0 %v2923_v8  ;;  %2216 = vmatprep.subr.bf16.mxu1 %v2926_v9 }
 0x1e5   :  { %2111 = vmatpush1.bf16.msra.mxu0 %v2921_v10  ;;  %2217 = vmatpush1.bf16.msra.mxu1 %v2924_v12 }
 0x1e6   :  { %2112 = vmatprep.subr.bf16.mxu0 %v2929_v13  ;;  %2218 = vmatprep.subr.bf16.mxu1 %v2932_v14 }
 0x1e9   :  { %2113 = vmatpush1.bf16.msra.mxu0 %v2927_v15  ;;  %2219 = vmatpush1.bf16.msra.mxu1 %v2930_v16 }
 0x1ea   :  { %2114 = vmatprep.subr.bf16.mxu0 %v2935_v17  ;;  %2220 = vmatprep.subr.bf16.mxu1 %v2938_v18 }
 0x1ed   :  { %2115 = vmatpush1.bf16.msra.mxu0 %v2933_v19  ;;  %2221 = vmatpush1.bf16.msra.mxu1 %v2936_v20 }
 0x1ee   :  { %2116 = vmatprep.subr.bf16.mxu0 %v2941_v21  ;;  %2222 = vmatprep.subr.bf16.mxu1 %v2944_v22 }
 0x1f1   :  { %2117 = vmatpush1.bf16.msra.mxu0 %v2939_v23  ;;  %2223 = vmatpush1.bf16.msra.mxu1 %v2942_v24 }
 0x1f2   :  { %2118 = vmatprep.subr.bf16.mxu0 %v2947_v25  ;;  %2224 = vmatprep.subr.bf16.mxu1 %v2950_v26 }
 0x1f5   :  { %2119 = vmatpush1.bf16.msra.mxu0 %v2945_v27  ;;  %2225 = vmatpush1.bf16.msra.mxu1 %v2948_v28  ;;  %v2981_v27 = vld [vmem:[#allocation6 + $0x200] ss:$16 sps:$4 sm:$0xff]   ;;  %v2984_v28 = vld [vmem:[#allocation6 + $0x208] ss:$16 sps:$4 sm:$0xff]  }
 0x1f6   :  { %2120 = vmatprep.subr.bf16.mxu0 %v2953_v29  ;;  %2226 = vmatprep.subr.bf16.mxu1 %v2956_v30 }
 0x1f9   :  { %2121 = vmatpush1.bf16.msra.mxu0 %v2951_v31  ;;  %2227 = vmatpush1.bf16.msra.mxu1 %v2954_v33 }
 0x1fa   :  { %2122 = vmatprep.subr.bf16.mxu0 %v2959_v34  ;;  %2228 = vmatprep.subr.bf16.mxu1 %v2962_v35  ;;  %v2989_v34 = vld [vmem:[#allocation6 + $0x224] ss:$16 sps:$4 sm:$0xff]   ;;  %v2992_v35 = vld [vmem:[#allocation6 + $0x22c] ss:$16 sps:$4 sm:$0xff]  }
 0x1fd   :  { %2123 = vmatpush1.bf16.msra.mxu0 %v2957_v36  ;;  %2229 = vmatpush1.bf16.msra.mxu1 %v2960_v37 }
 0x1fe   :  { %2124 = vmatprep.subr.bf16.mxu0 %v2965_v38  ;;  %2230 = vmatprep.subr.bf16.mxu1 %v2968_v39 }
 0x201   :  { %2125 = vmatpush1.bf16.msra.mxu0 %v2963_v40  ;;  %2231 = vmatpush1.bf16.msra.mxu1 %v2966_v41 }
 0x202   :  { %2126 = vmatprep.subr.bf16.mxu0 %v2971_v42  ;;  %2232 = vmatprep.subr.bf16.mxu1 %v2974_v43 }
 0x205   :  { %2127 = vmatpush1.bf16.msra.mxu0 %v2969_v44  ;;  %2233 = vmatpush1.bf16.msra.mxu1 %v2972_v45 }
 0x206   :  { %2128 = vmatprep.subr.bf16.mxu0 %v2977_v46  ;;  %2234 = vmatprep.subr.bf16.mxu1 %v2980_v47  ;;  %v2987_v46 = vld [vmem:[#allocation6 + $0x220] ss:$16 sps:$4 sm:$0xff]   ;;  %v2990_v47 = vld [vmem:[#allocation6 + $0x228] ss:$16 sps:$4 sm:$0xff]  }
 0x209   :  { %2129 = vmatpush1.bf16.msra.mxu0 %v2975_v48  ;;  %2235 = vmatpush1.bf16.msra.mxu1 %v2978_v49  ;;  %v2995_v48 = vld [vmem:[#allocation6 + $0x244] ss:$16 sps:$4 sm:$0xff]  }
 0x20a   :  { %2151 = vmatprep.subr.bf16.mxu0 %v2983_v50  ;;  %2257 = vmatprep.subr.bf16.mxu1 %v2986_v51 }
 0x29e   :  { %v1165_v63 = vpop.f32.mrb[8].mxu0  ;;  %v1271_v32 = vpop.f32.mrb[8].mxu1 }
 0x29f   :  { %v2628_v58 = vadd.f32 %v1165_v63, %v421_v60  ;;  %v2636_v0 = vadd.f32 %v1271_v32, %v429_v61  ;;  %v1167_v1 = vpop.f32.mrb[9].mxu0  ;;  %v1273_v2 = vpop.f32.mrb[9].mxu1  ;;  %v2998_v63 = vld [vmem:[#allocation6 + $0x24c] ss:$16 sps:$4 sm:$0xff]  }
 0x2a0   :  { %v2629_v3 = vadd.f32 %v1167_v1, %v425_v11  ;;  %v2637_v4 = vadd.f32 %v1273_v2, %v433_v62  ;;  %v1169_v5 = vpop.f32.mrb[10].mxu0  ;;  %v1275_v6 = vpop.f32.mrb[10].mxu1  ;;  %v2993_v2 = vld [vmem:[#allocation6 + $0x240] ss:$16 sps:$4 sm:$0xff]  }
 0x2a1   :  { %v2630_v7 = vadd.f32 %v1169_v5, %v421_v60  ;;  %v2638_v53 = vadd.f32 %v1275_v6, %v429_v61  ;;  %v1171_v8 = vpop.f32.mrb[11].mxu0  ;;  %v1277_v9 = vpop.f32.mrb[11].mxu1  ;;  %v1290_v13 = vmax.f32 %v2628_v58, 0.0  ;;  %v1292_v14 = vmax.f32 %v2636_v0, 0.0  ;;  %v3004_v5 = vld [vmem:[#allocation6 + $0x26c] ss:$16 sps:$4 sm:$0xff]  }
 0x2a2   :  { %v2631_v10 = vadd.f32 %v1171_v8, %v425_v11  ;;  %v2639_v12 = vadd.f32 %v1277_v9, %v433_v62  ;;  %v1291_v17 = vmax.f32 %v2629_v3, 0.0  ;;  %v1293_v18 = vmax.f32 %v2637_v4, 0.0  ;;  %v2996_v3 = vld [vmem:[#allocation6 + $0x248] ss:$16 sps:$4 sm:$0xff]   ;;  %v3001_v4 = vld [vmem:[#allocation6 + $0x264] ss:$16 sps:$4 sm:$0xff]  }
 0x2a3   :  { %v1294_v15 = vmax.f32 %v2630_v7, 0.0  ;;  %v1296_v16 = vmax.f32 %v2638_v53, 0.0  ;;  %v2999_v6 = vld [vmem:[#allocation6 + $0x260] ss:$16 sps:$4 sm:$0xff]   ;;  %v3002_v7 = vld [vmem:[#allocation6 + $0x268] ss:$16 sps:$4 sm:$0xff]  }
 0x2a4   :  { %v1295_v19 = vmax.f32 %v2631_v10, 0.0  ;;  %v1297_v20 = vmax.f32 %v2639_v12, 0.0  ;;  %v3007_v53 = vld [vmem:[#allocation6 + $0x284] ss:$16 sps:$4 sm:$0xff]   ;;  %v3010_v8 = vld [vmem:[#allocation6 + $0x28c] ss:$16 sps:$4 sm:$0xff]  }
 0x2a5   :  { %v1322_v21 = vpack.c.bf16 %v1294_v15, %v1290_v13  ;;  %v3276_v22 = vpack.c.bf16 %v1296_v16, %v1292_v14  ;;  %v3005_v9 = vld [vmem:[#allocation6 + $0x280] ss:$16 sps:$4 sm:$0xff]   ;;  %v3008_v10 = vld [vmem:[#allocation6 + $0x288] ss:$16 sps:$4 sm:$0xff]   ;;  %v3013_v12 = vld [vmem:[#allocation6 + $0x2a4] ss:$16 sps:$4 sm:$0xff]  }
 0x2a6   :  { %v1323_v23 = vpack.c.bf16 %v1295_v19, %v1291_v17  ;;  %v1325_v24 = vpack.c.bf16 %v1297_v20, %v1293_v18  ;;  %v1175_v25 = vpop.f32.mrb[12].mxu0  ;;  %v1281_v26 = vpop.f32.mrb[12].mxu1  ;;  %v3016_v13 = vld [vmem:[#allocation6 + $0x2ac] ss:$16 sps:$4 sm:$0xff]   ;;  %v3011_v14 = vld [vmem:[#allocation6 + $0x2a0] ss:$16 sps:$4 sm:$0xff]  }
 0x2a7   :  { %v2632_v29 = vadd.f32 %v1175_v25, %v421_v60  ;;  %v2640_v30 = vadd.f32 %v1281_v26, %v429_v61  ;;  %v1177_v31 = vpop.f32.mrb[13].mxu0  ;;  %v1283_v33 = vpop.f32.mrb[13].mxu1  ;;  %v3014_v15 = vld [vmem:[#allocation6 + $0x2a8] ss:$16 sps:$4 sm:$0xff]   ;;  %v3019_v16 = vld [vmem:[#allocation6 + $0x2c4] ss:$16 sps:$4 sm:$0xff]  }
 0x2a8   :  { %v2633_v36 = vadd.f32 %v1177_v31, %v425_v11  ;;  %v2641_v37 = vadd.f32 %v1283_v33, %v433_v62  ;;  %v1179_v38 = vpop.f32.mrb[14].mxu0  ;;  %v1285_v39 = vpop.f32.mrb[14].mxu1  ;;  %2130 = vmatprep.mubr.bf16.mxu0 %v1323_v23  ;;  %2236 = vmatprep.mubr.bf16.mxu1 %v1323_v23  ;;  %v3022_v17 = vld [vmem:[#allocation6 + $0x2cc] ss:$16 sps:$4 sm:$0xff]   ;;  %v3017_v18 = vld [vmem:[#allocation6 + $0x2c0] ss:$16 sps:$4 sm:$0xff]  }
 0x2a9   :  { %v2634_v40 = vadd.f32 %v1179_v38, %v421_v60  ;;  %v2642_v41 = vadd.f32 %v1285_v39, %v429_v61  ;;  %v1181_v42 = vpop.f32.mrb[15].mxu0  ;;  %v1287_v43 = vpop.f32.mrb[15].mxu1  ;;  %2131 = vmatmul.mubr.bf16.vlgmr.msra.gmra.mrb[16].mxu0 %v1322_v21  ;;  %2237 = vmatmul.mubr.bf16.vlgmr.msra.gmra.mrb[16].mxu1 %v1322_v21  ;;  %v1298_v49 = vmax.f32 %v2632_v29, 0.0  ;;  %v1300_v50 = vmax.f32 %v2640_v30, 0.0  ;;  %v3020_v19 = vld [vmem:[#allocation6 + $0x2c8] ss:$16 sps:$4 sm:$0xff]  }
 0x2aa   :  { %v2635_v44 = vadd.f32 %v1181_v42, %v425_v11  ;;  %v2643_v45 = vadd.f32 %v1287_v43, %v433_v62  ;;  %2152 = vmatpush1.bf16.msra.mxu0 %v2981_v27  ;;  %2258 = vmatpush1.bf16.msra.mxu1 %v2984_v28  ;;  %v1299_v60 = vmax.f32 %v2633_v36, 0.0  ;;  %v1301_v61 = vmax.f32 %v2641_v37, 0.0  ;;  %v3025_v20 = vld [vmem:[#allocation6 + $0x2e4] ss:$16 sps:$4 sm:$0xff]   ;;  %v3028_v21 = vld [vmem:[#allocation6 + $0x2ec] ss:$16 sps:$4 sm:$0xff]  }
 0x2ab   :  { %v1302_v51 = vmax.f32 %v2634_v40, 0.0  ;;  %v1304_v56 = vmax.f32 %v2642_v41, 0.0  ;;  %2153 = vmatprep.subr.bf16.mxu0 %v2989_v34  ;;  %2259 = vmatprep.subr.bf16.mxu1 %v2992_v35  ;;  %v3023_v23 = vld [vmem:[#allocation6 + $0x2e0] ss:$16 sps:$4 sm:$0xff]   ;;  %v3031_v25 = vld [vmem:[#allocation6 + $0x304] ss:$16 sps:$4 sm:$0xff]  }
 0x2ac   :  { %v1303_v32 = vmax.f32 %v2635_v44, 0.0  ;;  %v1305_v58 = vmax.f32 %v2643_v45, 0.0  ;;  %v3034_v26 = vld [vmem:[#allocation6 + $0x30c] ss:$16 sps:$4 sm:$0xff]   ;;  %v3029_v27 = vld [vmem:[#allocation6 + $0x300] ss:$16 sps:$4 sm:$0xff]  }
 0x2ad   :  { %v1326_v0 = vpack.c.bf16 %v1302_v51, %v1298_v49  ;;  %v3278_v1 = vpack.c.bf16 %v1304_v56, %v1300_v50  ;;  %v3032_v28 = vld [vmem:[#allocation6 + $0x308] ss:$16 sps:$4 sm:$0xff]   ;;  %v3037_v29 = vld [vmem:[#allocation6 + $0x324] ss:$16 sps:$4 sm:$0xff]   ;;  %v3040_v30 = vld [vmem:[#allocation6 + $0x32c] ss:$16 sps:$4 sm:$0xff]  }
 0x2ae   :  { %v1327_v11 = vpack.c.bf16 %v1303_v32, %v1299_v60  ;;  %v3280_v62 = vpack.c.bf16 %v1305_v58, %v1301_v61  ;;  %2154 = vmatpush1.bf16.msra.mxu0 %v2987_v46  ;;  %2260 = vmatpush1.bf16.msra.mxu1 %v2990_v47  ;;  %v3035_v31 = vld [vmem:[#allocation6 + $0x320] ss:$16 sps:$4 sm:$0xff]   ;;  %v3038_v33 = vld [vmem:[#allocation6 + $0x328] ss:$16 sps:$4 sm:$0xff]   ;;  %v3043_v34 = vld [vmem:[#allocation6 + $0x344] ss:$16 sps:$4 sm:$0xff]  }
 0x2af   :  { %2155 = vmatprep.subr.bf16.mxu0 %v2995_v48  ;;  %2261 = vmatprep.subr.bf16.mxu1 %v2998_v63  ;;  %v3046_v35 = vld [vmem:[#allocation6 + $0x34c] ss:$16 sps:$4 sm:$0xff]   ;;  %v3041_v36 = vld [vmem:[#allocation6 + $0x340] ss:$16 sps:$4 sm:$0xff]   ;;  %v3044_v37 = vld [vmem:[#allocation6 + $0x348] ss:$16 sps:$4 sm:$0xff]  }
 0x2b0   :  { %2140 = vmatprep.mubr.bf16.mxu0 %v1327_v11  ;;  %2246 = vmatprep.mubr.bf16.mxu1 %v1327_v11  ;;  %v3049_v38 = vld [vmem:[#allocation6 + $0x364] ss:$16 sps:$4 sm:$0xff]   ;;  %v3052_v39 = vld [vmem:[#allocation6 + $0x36c] ss:$16 sps:$4 sm:$0xff]   ;;  %v3047_v40 = vld [vmem:[#allocation6 + $0x360] ss:$16 sps:$4 sm:$0xff]  }
 0x2b1   :  { %2141 = vmatmul.mubr.bf16.gmra.mrb[20].mxu0 %v1326_v0  ;;  %2247 = vmatmul.mubr.bf16.gmra.mrb[20].mxu1 %v1326_v0  ;;  %v3050_v41 = vld [vmem:[#allocation6 + $0x368] ss:$16 sps:$4 sm:$0xff]   ;;  %v3055_v42 = vld [vmem:[#allocation6 + $0x384] ss:$16 sps:$4 sm:$0xff]   ;;  %v3058_v43 = vld [vmem:[#allocation6 + $0x38c] ss:$16 sps:$4 sm:$0xff]  }
 0x2b2   :  { %2156 = vmatpush1.bf16.msra.mxu0 %v2993_v2  ;;  %2262 = vmatpush1.bf16.msra.mxu1 %v2996_v3  ;;  %v3053_v44 = vld [vmem:[#allocation6 + $0x380] ss:$16 sps:$4 sm:$0xff]   ;;  %v3056_v45 = vld [vmem:[#allocation6 + $0x388] ss:$16 sps:$4 sm:$0xff]   ;;  %v3061_v46 = vld [vmem:[#allocation6 + $0x3a4] ss:$16 sps:$4 sm:$0xff]  }
 0x2b3   :  { %2183 = vmatprep.mubr.bf16.mxu0 %v1325_v24  ;;  %2289 = vmatprep.mubr.bf16.mxu1 %v1325_v24  ;;  %v3026_v24 = vld [vmem:[#allocation6 + $0x2e8] ss:$16 sps:$4 sm:$0xff]   ;;  %v3064_v47 = vld [vmem:[#allocation6 + $0x3ac] ss:$16 sps:$4 sm:$0xff]   ;;  %v3059_v48 = vld [vmem:[#allocation6 + $0x3a0] ss:$16 sps:$4 sm:$0xff]  }
 0x2b4   :  { %2157 = vmatprep.subr.bf16.mxu0 %v3001_v4  ;;  %2263 = vmatprep.subr.bf16.mxu1 %v3004_v5  ;;  %v3062_v49 = vld [vmem:[#allocation6 + $0x3a8] ss:$16 sps:$4 sm:$0xff]   ;;  %v3067_v50 = vld [vmem:[#allocation6 + $0x3c4] ss:$16 sps:$4 sm:$0xff]   ;;  %v3070_v51 = vld [vmem:[#allocation6 + $0x3cc] ss:$16 sps:$4 sm:$0xff]  }
 0x2b5   :  { %v3065_v56 = vld [vmem:[#allocation6 + $0x3c0] ss:$16 sps:$4 sm:$0xff]   ;;  %v3068_v63 = vld [vmem:[#allocation6 + $0x3c8] ss:$16 sps:$4 sm:$0xff]   ;;  %v3073_v60 = vld [vmem:[#allocation6 + $0x3e4] ss:$16 sps:$4 sm:$0xff]  }
 0x2b6   :  { %2158 = vmatpush1.bf16.msra.mxu0 %v2999_v6  ;;  %2264 = vmatpush1.bf16.msra.mxu1 %v3002_v7  ;;  %v3076_v61 = vld [vmem:[#allocation6 + $0x3ec] ss:$16 sps:$4 sm:$0xff]   ;;  %v3071_v32 = vld [vmem:[#allocation6 + $0x3e0] ss:$16 sps:$4 sm:$0xff]   ;;  %v3074_v58 = vld [vmem:[#allocation6 + $0x3e8] ss:$16 sps:$4 sm:$0xff]  }
 0x2b7   :  { %2159 = vmatprep.subr.bf16.mxu0 %v3007_v53  ;;  %2265 = vmatprep.subr.bf16.mxu1 %v3010_v8  ;;  %v242_v0 = vld [vmem:[%s3316_s5] sm:$0xf]  ;;  %s3155_s5 = smov [#allocation8]  }
 0x2b8   :  { %v247_v11 = vrot.slane %v242_v0, %v246_v54  ;;  %v255_v2 = vrot.slane %v242_v0, %v254_v55  ;;  %s2347_s14 = sshll.u32 %s3155_s5, 4  ;;  %s2348_s14 = int_to_ptr.vmem [resolvable:$true] %s2347_s14 }
 0x2b9   :  { %s3121_s15 = scalar_lea.vmem %s2348_s14, 2048  ;;  %p3126_p3 = scmp.lt.s32.totalorder %s2348_s14, %s2348_s14 }
 0x2ba   :  { %2160 = vmatpush1.bf16.msra.mxu0 %v3005_v9  ;;  %2266 = vmatpush1.bf16.msra.mxu1 %v3008_v10  ;;  %p3122_p2 = scmp.ne.s32.totalorder %s2348_s14, %s3121_s15  ;;  %p3127_p4 = scmp.lt.s32.totalorder %s3121_s15, %s3121_s15 }
 0x2bb   :  { %2161 = vmatprep.subr.bf16.mxu0 %v3013_v12  ;;  %2267 = vmatprep.subr.bf16.mxu1 %v3016_v13 }
 0x2bc   :  { %p3128_p5 = por %p3127_p4, %p3126_p3 }
 0x2be   :  { %2162 = vmatpush1.bf16.msra.mxu0 %v3011_v14  ;;  %2268 = vmatpush1.bf16.msra.mxu1 %v3014_v15  ;;  %p3129_p6 = pnand %p3128_p5, %p3122_p2 }
 0x2bf   :  { %2163 = vmatprep.subr.bf16.mxu0 %v3019_v16  ;;  %2269 = vmatprep.subr.bf16.mxu1 %v3022_v17 }
 0x2c2   :  { %2164 = vmatpush1.bf16.msra.mxu0 %v3017_v18  ;;  %2270 = vmatpush1.bf16.msra.mxu1 %v3020_v19 }
 0x2c3   :  { %2165 = vmatprep.subr.bf16.mxu0 %v3025_v20  ;;  %2271 = vmatprep.subr.bf16.mxu1 %v3028_v21 }
 0x2c6   :  { %2166 = vmatpush1.bf16.msra.mxu0 %v3023_v23  ;;  %2272 = vmatpush1.bf16.msra.mxu1 %v3026_v24 }
 0x2c7   :  { %2167 = vmatprep.subr.bf16.mxu0 %v3031_v25  ;;  %2273 = vmatprep.subr.bf16.mxu1 %v3034_v26 }
 0x2ca   :  { %2168 = vmatpush1.bf16.msra.mxu0 %v3029_v27  ;;  %2274 = vmatpush1.bf16.msra.mxu1 %v3032_v28 }
 0x2cb   :  { %2169 = vmatprep.subr.bf16.mxu0 %v3037_v29  ;;  %2275 = vmatprep.subr.bf16.mxu1 %v3040_v30 }
 0x2ce   :  { %2170 = vmatpush1.bf16.msra.mxu0 %v3035_v31  ;;  %2276 = vmatpush1.bf16.msra.mxu1 %v3038_v33 }
 0x2cf   :  { %2171 = vmatprep.subr.bf16.mxu0 %v3043_v34  ;;  %2277 = vmatprep.subr.bf16.mxu1 %v3046_v35 }
 0x2d2   :  { %2172 = vmatpush1.bf16.msra.mxu0 %v3041_v36  ;;  %2278 = vmatpush1.bf16.msra.mxu1 %v3044_v37 }
 0x2d3   :  { %2173 = vmatprep.subr.bf16.mxu0 %v3049_v38  ;;  %2279 = vmatprep.subr.bf16.mxu1 %v3052_v39 }
 0x2d6   :  { %2174 = vmatpush1.bf16.msra.mxu0 %v3047_v40  ;;  %2280 = vmatpush1.bf16.msra.mxu1 %v3050_v41 }
 0x2d7   :  { %2175 = vmatprep.subr.bf16.mxu0 %v3055_v42  ;;  %2281 = vmatprep.subr.bf16.mxu1 %v3058_v43 }
 0x2da   :  { %2176 = vmatpush1.bf16.msra.mxu0 %v3053_v44  ;;  %2282 = vmatpush1.bf16.msra.mxu1 %v3056_v45 }
 0x2db   :  { %2177 = vmatprep.subr.bf16.mxu0 %v3061_v46  ;;  %2283 = vmatprep.subr.bf16.mxu1 %v3064_v47 }
 0x2de   :  { %2178 = vmatpush1.bf16.msra.mxu0 %v3059_v48  ;;  %2284 = vmatpush1.bf16.msra.mxu1 %v3062_v49 }
 0x2df   :  { %2179 = vmatprep.subr.bf16.mxu0 %v3067_v50  ;;  %2285 = vmatprep.subr.bf16.mxu1 %v3070_v51 }
 0x2e2   :  { %2180 = vmatpush1.bf16.msra.mxu0 %v3065_v56  ;;  %2286 = vmatpush1.bf16.msra.mxu1 %v3068_v63 }
 0x2e3   :  { %2181 = vmatprep.subr.bf16.mxu0 %v3073_v60  ;;  %2287 = vmatprep.subr.bf16.mxu1 %v3076_v61 }
 0x2e6   :  { %2182 = vmatpush1.bf16.msra.mxu0 %v3071_v32  ;;  %2288 = vmatpush1.bf16.msra.mxu1 %v3074_v58 }
 0x2e9   :  { %2184 = vmatmul.mubr.bf16.vlgmr.msra.gmra.mrb[16].mxu0 %v3276_v22  ;;  %2290 = vmatmul.mubr.bf16.vlgmr.msra.gmra.mrb[16].mxu1 %v3276_v22  ;;  %v251_v22 = vrot.slane %v242_v0, %v250_v57 }
 0x2ea   :  { %2193 = vmatprep.mubr.bf16.mxu0 %v3280_v62  ;;  %2299 = vmatprep.mubr.bf16.mxu1 %v3280_v62  ;;  %v259_v62 = vrot.slane %v242_v0, %v258_v59 }
 0x2f1   :  { %2194 = vmatmul.mubr.bf16.gmra.mrb[20].mxu0 %v3278_v1  ;;  %2300 = vmatmul.mubr.bf16.gmra.mrb[20].mxu1 %v3278_v1 }
 0x3bc   :  { %v2185_v3 = vpop.f32.mrb[16].mxu0  ;;  %v2291_v4 = vpop.f32.mrb[16].mxu1 }
 0x3bd   :  { %v2310_v5 = vadd.f32 %v2185_v3, %v247_v11  ;;  %v2312_v1 = vadd.f32 %v2291_v4, %v255_v2  ;;  %v2187_v6 = vpop.f32.mrb[17].mxu0  ;;  %v2293_v7 = vpop.f32.mrb[17].mxu1 }
 0x3be   :  { %v2311_v53 = vadd.f32 %v2187_v6, %v251_v22  ;;  %v2313_v8 = vadd.f32 %v2293_v7, %v259_v62  ;;  %v2189_v9 = vpop.f32.mrb[18].mxu0  ;;  %v2295_v10 = vpop.f32.mrb[18].mxu1 }
 0x3bf   :  { %2326 = vst [vmem:[#allocation8] sm:$0xff] %v2310_v5  ;;  %2328 = vst [vmem:[#allocation8 + $0x10] sm:$0xff] %v2312_v1  ;;  %v2314_v54 = vadd.f32 %v2189_v9, %v247_v11  ;;  %v2316_v55 = vadd.f32 %v2295_v10, %v255_v2  ;;  %v2191_v12 = vpop.f32.mrb[19].mxu0  ;;  %v2297_v13 = vpop.f32.mrb[19].mxu1 }
 0x3c0   :  { %2327 = vst [vmem:[#allocation8 + $0x8] sm:$0xff] %v2311_v53  ;;  %2329 = vst [vmem:[#allocation8 + $0x18] sm:$0xff] %v2313_v8  ;;  %v2315_v52 = vadd.f32 %v2191_v12, %v251_v22  ;;  %v2317_v57 = vadd.f32 %v2297_v13, %v259_v62 }
 0x3c1   :  { %2330 = vst [vmem:[#allocation8 + $0x20] sm:$0xff] %v2314_v54  ;;  %2332 = vst [vmem:[#allocation8 + $0x30] sm:$0xff] %v2316_v55 }
 0x3c2   :  { %2331 = vst [vmem:[#allocation8 + $0x28] sm:$0xff] %v2315_v52  ;;  %2333 = vst [vmem:[#allocation8 + $0x38] sm:$0xff] %v2317_v57 }
 0x3c4   :  { %v2195_v59 = vpop.f32.mrb[20].mxu0  ;;  %v2301_v14 = vpop.f32.mrb[20].mxu1 }
 0x3c5   :  { %v2318_v15 = vadd.f32 %v2195_v59, %v247_v11  ;;  %v2320_v16 = vadd.f32 %v2301_v14, %v255_v2  ;;  %v2197_v17 = vpop.f32.mrb[21].mxu0  ;;  %v2303_v18 = vpop.f32.mrb[21].mxu1 }
 0x3c6   :  { %v2319_v19 = vadd.f32 %v2197_v17, %v251_v22  ;;  %v2321_v20 = vadd.f32 %v2303_v18, %v259_v62  ;;  %v2199_v21 = vpop.f32.mrb[22].mxu0  ;;  %v2305_v23 = vpop.f32.mrb[22].mxu1 }
 0x3c7   :  { %2334 = vst [vmem:[#allocation8 + $0x40] sm:$0xff] %v2318_v15  ;;  %2336 = vst [vmem:[#allocation8 + $0x50] sm:$0xff] %v2320_v16  ;;  %v2322_v24 = vadd.f32 %v2199_v21, %v247_v11  ;;  %v2324_v25 = vadd.f32 %v2305_v23, %v255_v2  ;;  %v2201_v26 = vpop.f32.mrb[23].mxu0  ;;  %v2307_v27 = vpop.f32.mrb[23].mxu1 }
 0x3c8   :  { %2335 = vst [vmem:[#allocation8 + $0x48] sm:$0xff] %v2319_v19  ;;  %2337 = vst [vmem:[#allocation8 + $0x58] sm:$0xff] %v2321_v20  ;;  %v2323_v28 = vadd.f32 %v2201_v26, %v251_v22  ;;  %v2325_v29 = vadd.f32 %v2307_v27, %v259_v62 }
 0x3c9   :  { %2338 = vst [vmem:[#allocation8 + $0x60] sm:$0xff] %v2322_v24  ;;  %2340 = vst [vmem:[#allocation8 + $0x70] sm:$0xff] %v2324_v25 }
 0x3ca   :  { %2339 = vst [vmem:[#allocation8 + $0x68] sm:$0xff] %v2323_v28  ;;  %2341 = vst [vmem:[#allocation8 + $0x78] sm:$0xff] %v2325_v29 }
 0x3cb   :  { %3132 = shalt.err (!%p3129_p6)
}
 0x3cc   :  { %s3133_s18 = scalar_lea.hbm %s3317_s6, 2048 }
 0x3cd   :  { %p3134_p7 = scmp.ne.s32.totalorder %s3317_s6, %s3133_s18  ;;  %p3137_p8 = scmp.lt.u32.totalorder %s3133_s18, %s3317_s6 }
 0x3cf   :  { %p3139_p9 = pnand %p3137_p8, %p3134_p7 }
 0x3d1   :  { %3142 = shalt.err (!%p3139_p9)
}
 0x3d2   :  { %s3156_s22 = smov 512   ;;  %s3157_s23 = smov 32  }
 0x3d3   :  { %2353 = dma.vmem_to_hbm [thread:$0]  %s2348_s14, 2048, %s3317_s6, [#allocation5], %s3156_s22, %s3156_s22, %s3157_s23  }
 0x3d4   :  { %3147 = dma.done.wait [#allocation5], 2048  }
 0x3d5   :  { %3148 = vsyncadd [#allocation5], 4294965248 }
 0x3d6   :  { %2357 = vsyncpa [#allocation4], 1 }
 0x3d7   :  { %2358 = vsyncpa [#allocation7], 1 }
 0x3d8   :  { %2359 = vsyncpa [#allocation5], 1 }

</bundles_post_ra>
